<compile_context>
chip_gen: v5e
topology: v5e:2x2
jax: 0.10.0
libtpu: 0.0.40
codegen_flags: <defaults>
</compile_context>

<pallas_src>
import functools

import jax
import jax.numpy as jnp
from jax.experimental import pallas as pl
from jax.experimental.pallas import tpu as pltpu


_VMEM_LIMIT = 32 * 1024 * 1024  # explicit scoped-VMEM budget (safe on v5e/v6e/v7x)


def _round_up(x, m):
    return ((x + m - 1) // m) * m


# ----------------------------- Pallas kernels ------------------------------

def _conv3x3_bias_kernel(H, W, x_ref, w_ref, b_ref, o_ref):
    """3x3 'same' conv, stride 1: im2col is formed in VMEM (9 shifted views).

    x_ref: (1, H+2, W+2, Cin)  bf16   (pre-padded in H/W by 1)
    w_ref: (9, Cin, Coutp)     bf16   (tap-major weight, Cout padded to 128x)
    b_ref: (1, Coutp)          f32
    o_ref: (1, H, W, Coutp)    f32
    """
    x = x_ref[0]                           # (H+2, W+2, Cin)
    w = w_ref[...]                         # (9, Cin, Coutp)
    cin = x.shape[-1]
    coutp = o_ref.shape[-1]
    acc = jnp.zeros((H * W, coutp), jnp.float32)
    for kh in range(3):                    # static unroll: 9 MXU matmuls
        for kw in range(3):
            xs = x[kh:kh + H, kw:kw + W, :].reshape(H * W, cin)
            acc = acc + jnp.dot(xs, w[kh * 3 + kw],
                                preferred_element_type=jnp.float32)
    y = acc + b_ref[...]                   # f32 epilogue, no activation
    o_ref[...] = y.reshape(1, H, W, coutp)


def conv3x3_bias(x_nhwc, w, b):
    """y = conv3x3(x) + b  (NHWC in/out, stride 1, pad 1, no BN / activation)."""
    N, H, W, Cin = x_nhwc.shape
    Cout = w.shape[0]
    Coutp = _round_up(Cout, 128)           # lane-dense output stores
    wk = jnp.transpose(w, (2, 3, 1, 0)).reshape(9, Cin, Cout)
    wk = jnp.pad(wk, ((0, 0), (0, 0), (0, Coutp - Cout))).astype(jnp.bfloat16)
    bp = jnp.pad(b, (0, Coutp - Cout)).astype(jnp.float32).reshape(1, Coutp)
    xp = jnp.pad(x_nhwc, ((0, 0), (1, 1), (1, 1), (0, 0))).astype(jnp.bfloat16)
    out = pl.pallas_call(
        functools.partial(_conv3x3_bias_kernel, H, W),
        out_shape=jax.ShapeDtypeStruct((N, H, W, Coutp), jnp.float32),
        grid=(N,),
        in_specs=[
            pl.BlockSpec((1, H + 2, W + 2, Cin), lambda n: (n, 0, 0, 0)),
            pl.BlockSpec((9, Cin, Coutp), lambda n: (0, 0, 0)),
            pl.BlockSpec((1, Coutp), lambda n: (0, 0)),
        ],
        out_specs=pl.BlockSpec((1, H, W, Coutp), lambda n: (n, 0, 0, 0)),
        compiler_params=pltpu.CompilerParams(
            dimension_semantics=("parallel",),
            vmem_limit_bytes=_VMEM_LIMIT),
    )(xp, wk, bp)
    return out[..., :Cout]


def _matmul_bias_act_kernel(act, x_ref, w_ref, b_ref, o_ref):
    """o = act(x @ w + bias); bf16 operands, f32 accumulation, f32 epilogue."""
    acc = jnp.dot(x_ref[...], w_ref[...], preferred_element_type=jnp.float32)
    y = acc + b_ref[...]
    if act == "silu":
        y = y * jax.nn.sigmoid(y)
    elif act == "sigmoid":
        y = jax.nn.sigmoid(y)
    # act == "none": identity
    o_ref[...] = y


def fused_matmul_bias_act(x2d, w2d, bias, act="none", tm_max=256):
    """Pallas: y = act(x2d @ w2d + bias), Cout padded lane-dense, M tiled."""
    M, K = x2d.shape
    Cout = w2d.shape[1]
    Coutp = _round_up(Cout, 128)
    wp = jnp.pad(w2d, ((0, 0), (0, Coutp - Cout))).astype(jnp.bfloat16)
    bp = jnp.pad(bias, (0, Coutp - Cout)).astype(jnp.float32).reshape(1, Coutp)

    tm = min(tm_max, _round_up(M, 16))
    Mp = _round_up(M, tm)
    xb = x2d.astype(jnp.bfloat16)
    if Mp != M:
        xb = jnp.pad(xb, ((0, Mp - M), (0, 0)))

    out = pl.pallas_call(
        functools.partial(_matmul_bias_act_kernel, act),
        out_shape=jax.ShapeDtypeStruct((Mp, Coutp), jnp.float32),
        grid=(Mp // tm,),
        in_specs=[
            pl.BlockSpec((tm, K), lambda i: (i, 0)),
            pl.BlockSpec((K, Coutp), lambda i: (0, 0)),
            pl.BlockSpec((1, Coutp), lambda i: (0, 0)),
        ],
        out_specs=pl.BlockSpec((tm, Coutp), lambda i: (i, 0)),
        compiler_params=pltpu.CompilerParams(
            dimension_semantics=("parallel",),
            vmem_limit_bytes=_VMEM_LIMIT),
    )(xb, wp, bp)
    return out[:M, :Cout]


# ------------------------------- JAX glue ----------------------------------

def deform_sample_cols(x_nhwc, offset, mask, k=3, pad=1, dil=1):
    """torchvision deform_conv2d sampling (stride=1, groups=1, def_groups=1).

    x_nhwc : (N, H, W, C) f32
    offset : (N, H, W, 2*k*k)  channel 2t = y-offset of tap t, 2t+1 = x-offset
    mask   : (N, H, W, k*k)    already sigmoid'ed
    returns: (N*H*W, k*k*C) sampled, masked columns (tap-major, channel-minor)
    """
    N, H, W, C = x_nhwc.shape
    KK = k * k
    taps = jnp.arange(KK)
    kh = (taps // k).astype(jnp.float32)
    kw = (taps % k).astype(jnp.float32)
    off_y = offset[..., 0::2]                              # (N,H,W,KK)
    off_x = offset[..., 1::2]
    base_y = jnp.arange(H, dtype=jnp.float32)[None, :, None, None]
    base_x = jnp.arange(W, dtype=jnp.float32)[None, None, :, None]
    py = base_y - pad + kh[None, None, None, :] * dil + off_y
    px = base_x - pad + kw[None, None, None, :] * dil + off_x
    y0 = jnp.floor(py)
    x0 = jnp.floor(px)
    dy = py - y0
    dx = px - x0

    x_flat = x_nhwc.reshape(N, H * W, C)

    # TODO(synk): data-dependent bilinear gather stays in plain JAX (4 vectorized
    # corner gathers shared by all 9 taps); no clean static-BlockSpec equivalent.
    def corner(yc, xc, wgt):
        valid = (yc >= 0) & (yc <= H - 1) & (xc >= 0) & (xc <= W - 1)
        yi = jnp.clip(yc, 0, H - 1).astype(jnp.int32)
        xi = jnp.clip(xc, 0, W - 1).astype(jnp.int32)
        idx = (yi * W + xi).reshape(N, H * W * KK)
        vals = jnp.take_along_axis(x_flat, idx[:, :, None], axis=1)  # (N,HW*KK,C)
        w = jnp.where(valid, wgt, 0.0).reshape(N, H * W * KK, 1)
        return vals * w

    cols = corner(y0, x0, (1.0 - dy) * (1.0 - dx))
    cols = cols + corner(y0, x0 + 1.0, (1.0 - dy) * dx)
    cols = cols + corner(y0 + 1.0, x0, dy * (1.0 - dx))
    cols = cols + corner(y0 + 1.0, x0 + 1.0, dy * dx)
    cols = cols * mask.reshape(N, H * W * KK, 1)
    return cols.reshape(N * H * W, KK * C)


def dcnv2_forward(x, params, eps=1e-5):
    """DCNv2: offset/mask conv -> modulated deformable conv -> BN -> SiLU."""
    N, Cin, H, W = x.shape
    Cout = params["weight"].shape[0]
    K = 9

    # Single NCHW -> NHWC transpose at module entry.
    x_nhwc = jnp.transpose(x, (0, 2, 3, 1)).astype(jnp.float32)

    # conv_offset_mask: 3x3 conv + bias (no BN / act), im2col fused in-kernel.
    om = conv3x3_bias(x_nhwc, params["off_w"], params["off_b"])     # (N,H,W,27)
    o1, o2, m = om[..., :K], om[..., K:2 * K], om[..., 2 * K:3 * K]
    offset = jnp.concatenate([o1, o2], axis=-1)                     # (N,H,W,18)
    mask = jax.nn.sigmoid(m)                                        # (N,H,W,9)

    # Deformable bilinear sampling -> (N*H*W, 9*Cin) columns.
    cols = deform_sample_cols(x_nhwc, offset, mask)

    # Fold BN scale into the weight columns; bias absorbs conv bias + BN shift.
    scale = params["bn_gamma"] / jnp.sqrt(params["bn_var"] + eps)
    bias = params["bn_beta"] - params["bn_mean"] * scale + params["bias"] * scale
    w2d = (jnp.transpose(params["weight"], (2, 3, 1, 0)).reshape(K * Cin, Cout)
           * scale[None, :])

    # Main matmul + bias + SiLU in one Pallas kernel (bf16 MXU, f32 epilogue).
    y2d = fused_matmul_bias_act(cols, w2d, bias, act="silu")        # (N*H*W,Cout)

    # Single NHWC -> NCHW transpose at module exit.
    return y2d.reshape(N, H, W, Cout).transpose(0, 3, 1, 2)


# --------------------------- parameter creation -----------------------------

def init_params(key, c_in, c_out):
    it = iter(jax.random.split(key, 32))

    def nrm(shape, s=0.1):
        return s * jax.random.normal(next(it), shape, dtype=jnp.float32)

    return dict(
        weight=nrm((c_out, c_in, 3, 3)),
        bias=nrm((c_out,)),
        # small offsets keep deformable sampling well inside the image
        off_w=nrm((27, c_in, 3, 3), s=0.01),
        off_b=nrm((27,), s=0.01),
        bn_gamma=1.0 + nrm((c_out,)),
        bn_beta=nrm((c_out,)),
        bn_mean=nrm((c_out,)),
        bn_var=1.0 + 0.1 * jnp.abs(jax.random.normal(next(it), (c_out,),
                                                     jnp.float32)),
    )


if __name__ == "__main__":
    key = jax.random.PRNGKey(0)
    kx, kp = jax.random.split(key)
    N, C_IN, C_OUT, H, W = 2, 4, 4, 16, 16
    x = jax.random.normal(kx, (N, C_IN, H, W), jnp.float32)
    params = init_params(kp, C_IN, C_OUT)
    out = dcnv2_forward(x, params)
    out = jax.block_until_ready(out)
    assert out.shape == (N, C_OUT, H, W)
    assert bool(jnp.all(jnp.isfinite(out)))
    print("KERNEL_OK")
</pallas_src>

<mosaic_0001>
module attributes {stable_mosaic.version = 11 : i64} {
  func.func @_conv3x3_bias_kernel(%arg0: i32, %arg1: memref<1x18x18x4xbf16, #tpu.memory_space<vmem>>, %arg2: memref<9x4x128xbf16, #tpu.memory_space<vmem>>, %arg3: memref<1x128xf32, #tpu.memory_space<vmem>>, %arg4: memref<1x16x16x128xf32, #tpu.memory_space<vmem>>) attributes {dimension_semantics = [#tpu.dimension_semantics<parallel>], iteration_bounds = array<i64: 2>, scalar_prefetch = 0 : i64, scratch_operands = 0 : i64, tpu.core_type = #tpu.core_type<tc>, window_params = [{transform_indices = @transform_0, window_bounds = array<i64: 1, 18, 18, 4>}, {pipeline_mode = #tpu.pipeline_mode<synchronous>, transform_indices = @transform_1, window_bounds = array<i64: 9, 4, 128>}, {pipeline_mode = #tpu.pipeline_mode<synchronous>, transform_indices = @transform_2, window_bounds = array<i64: 1, 128>}, {transform_indices = @transform_3, window_bounds = array<i64: 1, 16, 16, 128>}]} {
    %c0 = arith.constant 0 : index
    %c0_0 = arith.constant 0 : index
    %c0_1 = arith.constant 0 : index
    %c0_2 = arith.constant 0 : index
    %0 = vector.load %arg1[%c0, %c0_0, %c0_1, %c0_2] : memref<1x18x18x4xbf16, #tpu.memory_space<vmem>>, vector<1x18x18x4xbf16>
    %1 = vector.shape_cast %0 : vector<1x18x18x4xbf16> to vector<18x18x4xbf16>
    %c0_3 = arith.constant 0 : index
    %c0_4 = arith.constant 0 : index
    %c0_5 = arith.constant 0 : index
    %2 = vector.load %arg2[%c0_3, %c0_4, %c0_5] : memref<9x4x128xbf16, #tpu.memory_space<vmem>>, vector<9x4x128xbf16>
    %cst = arith.constant 0.000000e+00 : f32
    %3 = vector.broadcast %cst : f32 to vector<256x128xf32>
    %4 = vector.extract_strided_slice %1 {offsets = [0, 0, 0], sizes = [16, 16, 4], strides = [1, 1, 1]} : vector<18x18x4xbf16> to vector<16x16x4xbf16>
    %5 = vector.shape_cast %4 : vector<16x16x4xbf16> to vector<256x4xbf16>
    %6 = vector.extract_strided_slice %2 {offsets = [0, 0, 0], sizes = [1, 4, 128], strides = [1, 1, 1]} : vector<9x4x128xbf16> to vector<1x4x128xbf16>
    %7 = vector.shape_cast %6 : vector<1x4x128xbf16> to vector<4x128xbf16>
    %cst_6 = arith.constant dense<0.000000e+00> : vector<256x128xf32>
    %8 = tpu.matmul %5, %7, %cst_6 {dimension_numbers = #tpu.dot_dimension_numbers<[1], [0], [0], [1], [0, 0, 1, 1], [], []>} : vector<256x4xbf16>, vector<4x128xbf16>, vector<256x128xf32> -> vector<256x128xf32>
    %9 = arith.addf %3, %8 : vector<256x128xf32>
    %10 = vector.extract_strided_slice %1 {offsets = [0, 1, 0], sizes = [16, 16, 4], strides = [1, 1, 1]} : vector<18x18x4xbf16> to vector<16x16x4xbf16>
    %11 = vector.shape_cast %10 : vector<16x16x4xbf16> to vector<256x4xbf16>
    %12 = vector.extract_strided_slice %2 {offsets = [1, 0, 0], sizes = [1, 4, 128], strides = [1, 1, 1]} : vector<9x4x128xbf16> to vector<1x4x128xbf16>
    %13 = vector.shape_cast %12 : vector<1x4x128xbf16> to vector<4x128xbf16>
    %cst_7 = arith.constant dense<0.000000e+00> : vector<256x128xf32>
    %14 = tpu.matmul %11, %13, %cst_7 {dimension_numbers = #tpu.dot_dimension_numbers<[1], [0], [0], [1], [0, 0, 1, 1], [], []>} : vector<256x4xbf16>, vector<4x128xbf16>, vector<256x128xf32> -> vector<256x128xf32>
    %15 = arith.addf %9, %14 : vector<256x128xf32>
    %16 = vector.extract_strided_slice %1 {offsets = [0, 2, 0], sizes = [16, 16, 4], strides = [1, 1, 1]} : vector<18x18x4xbf16> to vector<16x16x4xbf16>
    %17 = vector.shape_cast %16 : vector<16x16x4xbf16> to vector<256x4xbf16>
    %18 = vector.extract_strided_slice %2 {offsets = [2, 0, 0], sizes = [1, 4, 128], strides = [1, 1, 1]} : vector<9x4x128xbf16> to vector<1x4x128xbf16>
    %19 = vector.shape_cast %18 : vector<1x4x128xbf16> to vector<4x128xbf16>
    %cst_8 = arith.constant dense<0.000000e+00> : vector<256x128xf32>
    %20 = tpu.matmul %17, %19, %cst_8 {dimension_numbers = #tpu.dot_dimension_numbers<[1], [0], [0], [1], [0, 0, 1, 1], [], []>} : vector<256x4xbf16>, vector<4x128xbf16>, vector<256x128xf32> -> vector<256x128xf32>
    %21 = arith.addf %15, %20 : vector<256x128xf32>
    %22 = vector.extract_strided_slice %1 {offsets = [1, 0, 0], sizes = [16, 16, 4], strides = [1, 1, 1]} : vector<18x18x4xbf16> to vector<16x16x4xbf16>
    %23 = vector.shape_cast %22 : vector<16x16x4xbf16> to vector<256x4xbf16>
    %24 = vector.extract_strided_slice %2 {offsets = [3, 0, 0], sizes = [1, 4, 128], strides = [1, 1, 1]} : vector<9x4x128xbf16> to vector<1x4x128xbf16>
    %25 = vector.shape_cast %24 : vector<1x4x128xbf16> to vector<4x128xbf16>
    %cst_9 = arith.constant dense<0.000000e+00> : vector<256x128xf32>
    %26 = tpu.matmul %23, %25, %cst_9 {dimension_numbers = #tpu.dot_dimension_numbers<[1], [0], [0], [1], [0, 0, 1, 1], [], []>} : vector<256x4xbf16>, vector<4x128xbf16>, vector<256x128xf32> -> vector<256x128xf32>
    %27 = arith.addf %21, %26 : vector<256x128xf32>
    %28 = vector.extract_strided_slice %1 {offsets = [1, 1, 0], sizes = [16, 16, 4], strides = [1, 1, 1]} : vector<18x18x4xbf16> to vector<16x16x4xbf16>
    %29 = vector.shape_cast %28 : vector<16x16x4xbf16> to vector<256x4xbf16>
    %30 = vector.extract_strided_slice %2 {offsets = [4, 0, 0], sizes = [1, 4, 128], strides = [1, 1, 1]} : vector<9x4x128xbf16> to vector<1x4x128xbf16>
    %31 = vector.shape_cast %30 : vector<1x4x128xbf16> to vector<4x128xbf16>
    %cst_10 = arith.constant dense<0.000000e+00> : vector<256x128xf32>
    %32 = tpu.matmul %29, %31, %cst_10 {dimension_numbers = #tpu.dot_dimension_numbers<[1], [0], [0], [1], [0, 0, 1, 1], [], []>} : vector<256x4xbf16>, vector<4x128xbf16>, vector<256x128xf32> -> vector<256x128xf32>
    %33 = arith.addf %27, %32 : vector<256x128xf32>
    %34 = vector.extract_strided_slice %1 {offsets = [1, 2, 0], sizes = [16, 16, 4], strides = [1, 1, 1]} : vector<18x18x4xbf16> to vector<16x16x4xbf16>
    %35 = vector.shape_cast %34 : vector<16x16x4xbf16> to vector<256x4xbf16>
    %36 = vector.extract_strided_slice %2 {offsets = [5, 0, 0], sizes = [1, 4, 128], strides = [1, 1, 1]} : vector<9x4x128xbf16> to vector<1x4x128xbf16>
    %37 = vector.shape_cast %36 : vector<1x4x128xbf16> to vector<4x128xbf16>
    %cst_11 = arith.constant dense<0.000000e+00> : vector<256x128xf32>
    %38 = tpu.matmul %35, %37, %cst_11 {dimension_numbers = #tpu.dot_dimension_numbers<[1], [0], [0], [1], [0, 0, 1, 1], [], []>} : vector<256x4xbf16>, vector<4x128xbf16>, vector<256x128xf32> -> vector<256x128xf32>
    %39 = arith.addf %33, %38 : vector<256x128xf32>
    %40 = vector.extract_strided_slice %1 {offsets = [2, 0, 0], sizes = [16, 16, 4], strides = [1, 1, 1]} : vector<18x18x4xbf16> to vector<16x16x4xbf16>
    %41 = vector.shape_cast %40 : vector<16x16x4xbf16> to vector<256x4xbf16>
    %42 = vector.extract_strided_slice %2 {offsets = [6, 0, 0], sizes = [1, 4, 128], strides = [1, 1, 1]} : vector<9x4x128xbf16> to vector<1x4x128xbf16>
    %43 = vector.shape_cast %42 : vector<1x4x128xbf16> to vector<4x128xbf16>
    %cst_12 = arith.constant dense<0.000000e+00> : vector<256x128xf32>
    %44 = tpu.matmul %41, %43, %cst_12 {dimension_numbers = #tpu.dot_dimension_numbers<[1], [0], [0], [1], [0, 0, 1, 1], [], []>} : vector<256x4xbf16>, vector<4x128xbf16>, vector<256x128xf32> -> vector<256x128xf32>
    %45 = arith.addf %39, %44 : vector<256x128xf32>
    %46 = vector.extract_strided_slice %1 {offsets = [2, 1, 0], sizes = [16, 16, 4], strides = [1, 1, 1]} : vector<18x18x4xbf16> to vector<16x16x4xbf16>
    %47 = vector.shape_cast %46 : vector<16x16x4xbf16> to vector<256x4xbf16>
    %48 = vector.extract_strided_slice %2 {offsets = [7, 0, 0], sizes = [1, 4, 128], strides = [1, 1, 1]} : vector<9x4x128xbf16> to vector<1x4x128xbf16>
    %49 = vector.shape_cast %48 : vector<1x4x128xbf16> to vector<4x128xbf16>
    %cst_13 = arith.constant dense<0.000000e+00> : vector<256x128xf32>
    %50 = tpu.matmul %47, %49, %cst_13 {dimension_numbers = #tpu.dot_dimension_numbers<[1], [0], [0], [1], [0, 0, 1, 1], [], []>} : vector<256x4xbf16>, vector<4x128xbf16>, vector<256x128xf32> -> vector<256x128xf32>
    %51 = arith.addf %45, %50 : vector<256x128xf32>
    %52 = vector.extract_strided_slice %1 {offsets = [2, 2, 0], sizes = [16, 16, 4], strides = [1, 1, 1]} : vector<18x18x4xbf16> to vector<16x16x4xbf16>
    %53 = vector.shape_cast %52 : vector<16x16x4xbf16> to vector<256x4xbf16>
    %54 = vector.extract_strided_slice %2 {offsets = [8, 0, 0], sizes = [1, 4, 128], strides = [1, 1, 1]} : vector<9x4x128xbf16> to vector<1x4x128xbf16>
    %55 = vector.shape_cast %54 : vector<1x4x128xbf16> to vector<4x128xbf16>
    %cst_14 = arith.constant dense<0.000000e+00> : vector<256x128xf32>
    %56 = tpu.matmul %53, %55, %cst_14 {dimension_numbers = #tpu.dot_dimension_numbers<[1], [0], [0], [1], [0, 0, 1, 1], [], []>} : vector<256x4xbf16>, vector<4x128xbf16>, vector<256x128xf32> -> vector<256x128xf32>
    %57 = arith.addf %51, %56 : vector<256x128xf32>
    %c0_15 = arith.constant 0 : index
    %c0_16 = arith.constant 0 : index
    %58 = vector.load %arg3[%c0_15, %c0_16] : memref<1x128xf32, #tpu.memory_space<vmem>>, vector<1x128xf32>
    %59 = vector.broadcast %58 : vector<1x128xf32> to vector<256x128xf32>
    %60 = arith.addf %57, %59 : vector<256x128xf32>
    %61 = vector.shape_cast %60 : vector<256x128xf32> to vector<1x16x16x128xf32>
    %c0_17 = arith.constant 0 : index
    %c0_18 = arith.constant 0 : index
    %c0_19 = arith.constant 0 : index
    %c0_20 = arith.constant 0 : index
    %62 = vector.load %arg4[%c0_17, %c0_18, %c0_19, %c0_20] : memref<1x16x16x128xf32, #tpu.memory_space<vmem>>, vector<1x16x16x128xf32>
    tpu.vector_store %arg4[%c0_17, %c0_18, %c0_19, %c0_20], %61 {strides = array<i32>} : memref<1x16x16x128xf32, #tpu.memory_space<vmem>>, vector<1x16x16x128xf32>,
    return
  }
  func.func @transform_0(%arg0: i32) -> (i32, i32, i32, i32) {
    %c0_i32 = arith.constant 0 : i32
    %c0_i32_0 = arith.constant 0 : i32
    %c0_i32_1 = arith.constant 0 : i32
    %c0_i32_2 = arith.constant 0 : i32
    return %arg0, %c0_i32, %c0_i32_0, %c0_i32_1 : i32, i32, i32, i32
  }
  func.func @transform_1(%arg0: i32) -> (i32, i32, i32) {
    %c0_i32 = arith.constant 0 : i32
    %c0_i32_0 = arith.constant 0 : i32
    %c0_i32_1 = arith.constant 0 : i32
    %c0_i32_2 = arith.constant 0 : i32
    return %c0_i32, %c0_i32_0, %c0_i32_1 : i32, i32, i32
  }
  func.func @transform_2(%arg0: i32) -> (i32, i32) {
    %c0_i32 = arith.constant 0 : i32
    %c0_i32_0 = arith.constant 0 : i32
    %c0_i32_1 = arith.constant 0 : i32
    return %c0_i32, %c0_i32_0 : i32, i32
  }
  func.func @transform_3(%arg0: i32) -> (i32, i32, i32, i32) {
    %c0_i32 = arith.constant 0 : i32
    %c0_i32_0 = arith.constant 0 : i32
    %c0_i32_1 = arith.constant 0 : i32
    %c0_i32_2 = arith.constant 0 : i32
    return %arg0, %c0_i32, %c0_i32_0, %c0_i32_1 : i32, i32, i32, i32
  }
}

</mosaic_0001>

<bundles_post_ra>
// kernel: tpu_custom_call.1
= control target key start
LH: loop header
LB: loop body
LE: loop exit
PB: predicated region body
PF: predicated region fallthrough
CT: control target
= control target key end

     0   :  { %8 = vsyncpa [#allocation3], 0  ;;  %s3985_s0 = inlined_call_operand.vmem [shape: bf16[2,18,18,4], index: 0, kind: input, shape index: {}]   ;;  %s3986_s1 = inlined_call_operand.vmem [shape: bf16[9,4,128], index: 1, kind: input, shape index: {}]   ;;  %s3987_s2 = inlined_call_operand.vmem [shape: f32[1,128], index: 2, kind: input, shape index: {}]   ;;  %s3988_s3 = inlined_call_operand.hbm [shape: f32[2,16,16,128], index: 3, kind: output, shape index: {}]  }
   0x1   :  { %10 = vsyncpa [#allocation3 + $0x1], 0  ;;  %s2779_s12 = smov 0   ;;  %s2781_s13 = smov 0  }
   0x2   :  { %s2783_s14 = smov 0   ;;  %s2785_s15 = smov 0  }
   0x3 LB: > { %s2800_s16 = sadd.s32 4294967295, %s2755_s15   ;;  %s2375_s17 = sadd.s32 4294967294, %s2755_s15   ;;  %s2755_s15 = sphi %s2785_s15, %s4132_s15   ;;  %s2751_s14 = sphi %s2783_s14, %s4131_s14   ;;  %s2747_s13 = sphi %s2781_s13, %s4130_s13   ;;  %s2743_s12 = sphi %s2779_s12, %s4129_s12  }
   0x4   : > { %s2804_s18 = sadd.s32 1, %s2755_s15   ;;  %s91_s19 = sadd.s32 1, %s2751_s14 }
   0x5   : > { %s88_s20 = ssub.s32 %s2755_s15, %s2804_s18  ;;  %p101_p0 = scmp.ne.s32.totalorder %s2751_s14, %s2747_s13 }
   0x6   : > { %p89_p1 = scmp.eq.s32.totalorder %s88_s20, 0  ;;  %p102_p2 = scmp.eq.s32.totalorder %s2800_s16, 1 }
   0x7   : > { %p107_p3 = scmp.ne.s32.totalorder %s2747_s13, %s2743_s12  ;;  %p108_p4 = scmp.eq.s32.totalorder %s2375_s17, 1 }
   0x8   : > { %s2815_s21 = scalar_select %p89_p1, %s2751_s14, %s91_s19  }
   0x9   : > { %p2817_p5 = por %p102_p2, %p101_p0  ;;  %p2821_p6 = por %p108_p4, %p107_p3 }
   0xa   : > { %p2378_p7 = scmp.ge.s32.totalorder %s2755_s15, 1  ;;  %p140_p8 = scmp.lt.s32.totalorder %s2755_s15, 3 }
   0xc   : > { %p141_p9 = pnand %p2378_p7, %p140_p8 }
   0xe   : > { %144 = sbr.rel (%p141_p9) target bundleno = 768 (0x300), region = 32 }
  0x13   : > { %v225_v0 = vld [vmem:[%s3986_s1 + $0x2] sm:$0x3]  ;;  %vm717_vm0 = vcmask 1041408   ;;  %p164_p10 = scmp.lt.s32.totalorder %s2800_s16, 1  ;;  %v226_v2 = vld [vmem:[%s3986_s1 + $0x4] sm:$0x3] }
  0x14   : > { %v719_v1 = vsel %vm717_vm0, %v225_v0, 0  ;;  %v1258_v3 = vsel %vm717_vm0, %v226_v2, 0  ;;  %v227_v4 = vld [vmem:[%s3986_s1 + $0x6] sm:$0x3]  ;;  %v224_v5 = vld [vmem:[%s3986_s1] sm:$0x3] }
  0x15   : > { %2639 = vmatpush.bf16.msra.mxu1 %v719_v1  ;;  %2640 = vmatpush.bf16.msra.mxu2 %v719_v1  ;;  %s165_s28 = scalar_select %p164_p10, %s2800_s16, 1  ;;  %v228_v6 = vld [vmem:[%s3986_s1 + $0x8] sm:$0x3]  ;;  %v1390_v7 = vsel %vm717_vm0, %v227_v4, 0  ;;  %v939_v8 = vsel %vm717_vm0, %v224_v5, 0  ;;  %vm668_vm4 = vcmask 31744  }
  0x16   : > { %2641 = vmatpush.bf16.msra.mxu3 %v719_v1  ;;  %728 = vmatpush.bf16.msra.mxu0 %v719_v1  ;;  %v1544_v9 = vsel %vm717_vm0, %v228_v6, 0  ;;  %vm233_vm1 = vsmask.f32 3328  ;;  %vm234_vm2 = vsmask.f32 7440  ;;  %vm1046_vm5 = vcmask 1042432  }
  0x17   : > { %s2642_s8 = smul.u32 216, %s165_s28  ;;  %vm2879_vm3 = vmor %vm233_vm1, %vm234_vm2  ;;  %vm1047_vm6 = vcmask 1046532   ;;  %s161_s29 = sand.u32 1, %s2747_s13  }
  0x18   : > { %vm3182_vm7 = vmor %vm1046_vm5, %vm1047_vm6  ;;  %s2379_s30 = sshll.u32 %s161_s29, 8  ;;  %s2638_s7 = sshll.u32 %s2800_s16, 8 }
  0x19   : > { %1267 = vmatpush.bf16.msrb.mxu2 %v1258_v3  ;;  %948 = vmatpush.bf16.msrb.mxu1 %v939_v8  ;;  %s2852_s11 = scalar_lea.vmem %s3985_s0, %s2642_s8  ;;  %s3778_s6 = scalar_lea.vmem [#allocation2], %s2379_s30 }
  0x1a   : > { %1399 = vmatpush.bf16.msrb.mxu3 %v1390_v7  ;;  %1553 = vmatpush.bf16.msrb.mxu0 %v1544_v9  ;;  %v2855_v10 = vld [vmem:[%s2852_s11 + $0x30] sm:$0xf]  ;;  %v2858_v11 = vld [vmem:[%s2852_s11 + $0x34] sm:$0xf]  ;;  %v2861_v12 = vld [vmem:[%s2852_s11 + $0x38] sm:$0x1]  ;;  %s2309_s10 = scalar_lea.hbm %s3988_s3, %s2638_s7 }
  0x1b   : > { %v333_v13 = vshrl.u32 %v2855_v10, 16  ;;  %v336_v14 = vshll.u32 %v2855_v10, 16  ;;  %v342_v15 = vshll.u32 %v2858_v11, 16  ;;  %v346_v16 = vshrl.u32 %v2858_v11, 16  ;;  %v194_v17 = vld [vmem:[%s2852_s11 + $0x60] sm:$0xf] }
  0x1c   : > { %v352_v18 = vshll.u32 %v2861_v12, 16  ;;  %v2870_v19 = vld [vmem:[%s2852_s11 + $0x64] sm:$0xf]  ;;  %v196_v20 = vld [vmem:[%s2852_s11 + $0x68] sm:$0x1]  ;;  %v429_v21 = vshrl.u32 %v194_v17, 16 }
  0x1d   : > { %v335_v22 = vrot.slane %v333_v13, 4  ;;  %v338_v23 = vrot.slane %v336_v14, 5  ;;  %v344_v24 = vrot.slane %v342_v15, 5  ;;  %v348_v25 = vrot.slane %v346_v16, 4  ;;  %v206_v26 = vld [vmem:[%s2852_s11 + $0x90] sm:$0xf] }
  0x1e   : > { %v354_v27 = vrot.slane %v352_v18, 5  ;;  %v431_v28 = vrot.slane %v429_v21, 4  ;;  %v432_v29 = vshll.u32 %v194_v17, 16  ;;  %v438_v30 = vshll.u32 %v2870_v19, 16  ;;  %v207_v35 = vld [vmem:[%s2852_s11 + $0x94] sm:$0xf] }
  0x1f   : > { %v339_v31 = vor.u32 %v338_v23, %v335_v22  ;;  %v349_v32 = vor.u32 %v348_v25, %v344_v24  ;;  %v442_v33 = vshrl.u32 %v2870_v19, 16  ;;  %v448_v34 = vshll.u32 %v196_v20, 16  ;;  %v208_v45 = vld [vmem:[%s2852_s11 + $0x98] sm:$0x1]  ;;  %v2889_v61 = vld [vmem:[%s2852_s11] sm:$0xf] }
  0x20   : > { %v434_v37 = vrot.slane %v432_v29, 5  ;;  %v440_v38 = vrot.slane %v438_v30, 5  ;;  %v525_v39 = vshrl.u32 %v206_v26, 16  ;;  %v528_v47 = vshll.u32 %v206_v26, 16  ;;  %v2896_v1 = vld [vmem:[%s2852_s11 + $0x4] sm:$0xf] }
  0x21   : > { %v340_v40 = vrot.slane %v339_v31, 4  ;;  %v350_v41 = vrot.slane %v349_v32, 4  ;;  %v444_v42 = vrot.slane %v442_v33, 4  ;;  %v450_v43 = vrot.slane %v448_v34, 5  ;;  %v2899_v2 = vld [vmem:[%s2852_s11 + $0x8] sm:$0x1] }
  0x22   : > { %v435_v44 = vor.u32 %v434_v37, %v431_v28  ;;  %v527_v46 = vrot.slane %v525_v39, 4  ;;  %v534_v48 = vshll.u32 %v207_v35, 16  ;;  %v538_v52 = vshrl.u32 %v207_v35, 16  ;;  %v2915_v23 = vld [vmem:[%s2852_s11 + $0x3c] sm:$0xf]  ;;  %s2312_s17 = sshll.u32 %s2309_s10, 4  ;;  %s2313_s17 = int_to_ptr.hbm [resolvable:$true] %s2312_s17 }
  0x23   : > { %v345_v49 = vsel %vm2879_vm3, %v340_v40, %v344_v24  ;;  %v355_v50 = vsel %vm2879_vm3, %v350_v41, %v354_v27  ;;  %v445_v51 = vor.u32 %v444_v42, %v440_v38  ;;  %v530_v56 = vrot.slane %v528_v47, 5  ;;  %v2918_v24 = vld [vmem:[%s2852_s11 + $0x40] sm:$0xf]  ;;  %v2923_v29 = vld [vmem:[%s2852_s11 + $0x44] sm:$0x1]  ;;  %s2298_s16 = scalar_lea.sflag [#allocation3], %s161_s29 }
  0x24   : > { %v628_v53 = vunpack.c.l.b16 %v345_v49  ;;  %v629_v54 = vunpack.c.l.b16 %v355_v50  ;;  %v436_v55 = vrot.slane %v435_v44, 4  ;;  %v536_v58 = vrot.slane %v534_v48, 5  ;;  %v2938_v47 = vld [vmem:[%s2852_s11 + $0x70] sm:$0xf]  ;;  %s2707_s19 = sshra.s32 %s2313_s17, 4  ;;  %s2713_s26 = scalar_lea.hbm %s3988_s3, 512  ;;  %s2708_s19 = int_to_ptr.hbm [resolvable:$true] %s2707_s19 }
  0x25   : > { %v446_v57 = vrot.slane %v445_v51, 4  ;;  %v540_v59 = vrot.slane %v538_v52, 4  ;;  %v544_v60 = vshll.u32 %v208_v45, 16  ;;  %v531_v0 = vor.u32 %v530_v56, %v527_v46  ;;  %v2945_v51 = vld [vmem:[%s2852_s11 + $0x74] sm:$0x1]  ;;  %s2709_s20 = scalar_lea.hbm %s2708_s19, 256  ;;  %p2714_p0 = scmp.lt.s32.totalorder %s2708_s19, %s3988_s3 }
  0x26   : > { %v2891_v62 = vpack.c.b16 %v629_v54, %v628_v53  ;;  %v441_v63 = vsel %vm2879_vm3, %v436_v55, %v440_v38  ;;  %v237_v9 = vshrl.u32 %v2889_v61, 16  ;;  %v240_v13 = vshll.u32 %v2889_v61, 16  ;;  %v2931_v38 = vld [vmem:[%s2852_s11 + $0x6c] sm:$0xf]  ;;  %p2710_p11 = scmp.ne.s32.totalorder %s2708_s19, %s2709_s20  ;;  %p2715_p1 = scmp.lt.s32.totalorder %s2713_s26, %s2709_s20 }
  0x27   : > { %v451_v3 = vsel %vm2879_vm3, %v446_v57, %v450_v43  ;;  %v636_v4 = vunpack.c.l.b16 %v441_v63  ;;  %v541_v5 = vor.u32 %v540_v59, %v536_v58  ;;  %v546_v6 = vrot.slane %v544_v60, 5 }
  0x28   : > { %2385 = vmatmul.msk.bf16.vlgmr.msra.gmra.mxu1 %vm668_vm4, %v2891_v62  ;;  %v637_v7 = vunpack.c.l.b16 %v451_v3  ;;  %v532_v8 = vrot.slane %v531_v0, 4  ;;  %v246_v15 = vshll.u32 %v2896_v1, 16  ;;  %v250_v16 = vshrl.u32 %v2896_v1, 16  ;;  %p2711_p12 = pnand %p2710_p11, %p2817_p5  ;;  %p2716_p2 = por %p2715_p1, %p2714_p0 }
  0x29   : > { %v542_v14 = vrot.slane %v541_v5, 4  ;;  %v256_v17 = vshll.u32 %v2899_v2, 16  ;;  %v239_v21 = vrot.slane %v237_v9, 4  ;;  %v242_v22 = vrot.slane %v240_v13, 5  ;;  %v209_v5 = vld [vmem:[%s2852_s11 + $0x9c] sm:$0xf] }
  0x2a   : > { %v2910_v18 = vpack.c.b16 %v637_v7, %v636_v4  ;;  %v537_v20 = vsel %vm2879_vm3, %v532_v8, %v536_v58  ;;  %v248_v27 = vrot.slane %v246_v15, 5  ;;  %v252_v28 = vrot.slane %v250_v16, 4  ;;  %v210_v9 = vld [vmem:[%s2852_s11 + $0xa0] sm:$0xf]  ;;  %p2712_p13 = pneg %p2711_p12 }
  0x2b   : > { %v547_v25 = vsel %vm2879_vm3, %v542_v14, %v546_v6  ;;  %v644_v26 = vunpack.c.l.b16 %v537_v20  ;;  %v243_v31 = vor.u32 %v242_v22, %v239_v21  ;;  %v258_v32 = vrot.slane %v256_v17, 5  ;;  %v211_v17 = vld [vmem:[%s2852_s11 + $0xa4] sm:$0x1] }
  0x2c   : > { %4033 = vst [vmem:[#allocation5_spill] sm:$0xff] %v2910_v18  ;;  %2389 = vmatmul.msk.bf16.vlgmr.msra.gmra.mxu2 %vm668_vm4, %v2910_v18  ;;  %v645_v30 = vunpack.c.l.b16 %v547_v25  ;;  %v253_v33 = vor.u32 %v252_v28, %v248_v27  ;;  %v357_v34 = vshrl.u32 %v2915_v23, 16  ;;  %v360_v35 = vshll.u32 %v2915_v23, 16  ;;  %p2717_p3 = pnand %p2716_p2, %p2712_p13 }
  0x2d   : > { %v366_v37 = vshll.u32 %v2918_v24, 16  ;;  %v244_v40 = vrot.slane %v243_v31, 4  ;;  %v370_v41 = vshrl.u32 %v2918_v24, 16  ;;  %v376_v42 = vshll.u32 %v2923_v29, 16 }
  0x2e   : > { %v2933_v39 = vpack.c.b16 %v645_v30, %v644_v26  ;;  %v254_v43 = vrot.slane %v253_v33, 4  ;;  %v359_v44 = vrot.slane %v357_v34, 4  ;;  %v362_v45 = vrot.slane %v360_v35, 5  ;;  %v2963_v35 = vld [vmem:[%s2852_s11 + $0xc] sm:$0xf] }
  0x2f   : > { %v368_v46 = vrot.slane %v366_v37, 5  ;;  %v249_v48 = vsel %vm2879_vm3, %v244_v40, %v248_v27  ;;  %v372_v49 = vrot.slane %v370_v41, 4  ;;  %v378_v50 = vrot.slane %v376_v42, 5 }
  0x30   : > { %4034 = vst [vmem:[#allocation6_spill] sm:$0xff] %v2933_v39  ;;  %2393 = vmatmul.msk.bf16.vlgmr.msra.gmra.mxu3 %vm668_vm4, %v2933_v39  ;;  %v453_v52 = vshrl.u32 %v2931_v38, 16  ;;  %v259_v53 = vsel %vm2879_vm3, %v254_v43, %v258_v32  ;;  %v620_v54 = vunpack.c.l.b16 %v249_v48  ;;  %v363_v55 = vor.u32 %v362_v45, %v359_v44  ;;  %v2970_v43 = vld [vmem:[%s2852_s11 + $0x10] sm:$0xf]  ;;  %v2973_v48 = vld [vmem:[%s2852_s11 + $0x14] sm:$0x1] }
  0x31   : > { %v456_v56 = vshll.u32 %v2931_v38, 16  ;;  %v621_v57 = vunpack.c.l.b16 %v259_v53  ;;  %v373_v58 = vor.u32 %v372_v49, %v368_v46  ;;  %v462_v60 = vshll.u32 %v2938_v47, 16  ;;  %v3150_v39 = vld [vmem:[%s2852_s11 + $0x2c] sm:$0x1] }
  0x32   : > { %v455_v59 = vrot.slane %v453_v52, 4  ;;  %v364_v63 = vrot.slane %v363_v55, 4  ;;  %v466_v3 = vshrl.u32 %v2938_v47, 16  ;;  %v472_v4 = vshll.u32 %v2945_v51, 16 }
  0x33   : > { %v458_v0 = vrot.slane %v456_v56, 5  ;;  %v652_v6 = vpack.c.b16 %v621_v57, %v620_v54  ;;  %v374_v7 = vrot.slane %v373_v58, 4  ;;  %v464_v8 = vrot.slane %v462_v60, 5  ;;  %v2983_v58 = vld [vmem:[%s2852_s11 + $0x48] sm:$0xf] }
  0x34   : > { %v369_v13 = vsel %vm2879_vm3, %v364_v63, %v368_v46  ;;  %v468_v15 = vrot.slane %v466_v3, 4  ;;  %v474_v16 = vrot.slane %v472_v4, 5  ;;  %v549_v22 = vshrl.u32 %v209_v5, 16  ;;  %v2988_v3 = vld [vmem:[%s2852_s11 + $0x4c] sm:$0xf] }
  0x35   : > { %v459_v14 = vor.u32 %v458_v0, %v455_v59  ;;  %2381 = vmatmul.msk.bf16.vlgmr.msra.gmra.mxu0 %vm668_vm4, %v652_v6  ;;  %v379_v20 = vsel %vm2879_vm3, %v374_v7, %v378_v50  ;;  %v630_v21 = vunpack.c.l.b16 %v369_v13  ;;  %v552_v25 = vshll.u32 %v209_v5, 16 }
  0x36   : > { %v631_v26 = vunpack.c.l.b16 %v379_v20  ;;  %v469_v28 = vor.u32 %v468_v15, %v464_v8  ;;  %v558_v30 = vshll.u32 %v210_v9, 16  ;;  %v551_v31 = vrot.slane %v549_v22, 4  ;;  %v2995_v15 = vld [vmem:[%s2852_s11 + $0x50] sm:$0x1] }
  0x37   : > { %v460_v27 = vrot.slane %v459_v14, 4  ;;  %v554_v32 = vrot.slane %v552_v25, 5  ;;  %v562_v33 = vshrl.u32 %v210_v9, 16  ;;  %v568_v34 = vshll.u32 %v211_v17, 16 }
  0x38   : > { %v2965_v37 = vpack.c.b16 %v631_v26, %v630_v21  ;;  %v470_v41 = vrot.slane %v469_v28, 4  ;;  %v560_v42 = vrot.slane %v558_v30, 5  ;;  %v261_v52 = vshrl.u32 %v2963_v35, 16  ;;  %v3006_v28 = vld [vmem:[%s2852_s11 + $0x78] sm:$0xf] }
  0x39   : > { %v465_v40 = vsel %vm2879_vm3, %v460_v27, %v464_v8  ;;  %v555_v45 = vor.u32 %v554_v32, %v551_v31  ;;  %v564_v46 = vrot.slane %v562_v33, 4  ;;  %v570_v50 = vrot.slane %v568_v34, 5  ;;  %v3010_v34 = vld [vmem:[%s2852_s11 + $0x7c] sm:$0xf] }
  0x3a   : > { %v638_v44 = vunpack.c.l.b16 %v465_v40  ;;  %2386 = vmatmul.msk.bf16.gmra.mxu1 %vm668_vm4, %v2965_v37  ;;  %v475_v49 = vsel %vm2879_vm3, %v470_v41, %v474_v16  ;;  %v264_v53 = vshll.u32 %v2963_v35, 16  ;;  %v270_v57 = vshll.u32 %v2970_v43, 16 }
  0x3b   : > { %v639_v54 = vunpack.c.l.b16 %v475_v49  ;;  %v556_v55 = vrot.slane %v555_v45, 4  ;;  %v565_v56 = vor.u32 %v564_v46, %v560_v42  ;;  %v263_v59 = vrot.slane %v261_v52, 4 }
  0x3c   : > { %v266_v60 = vrot.slane %v264_v53, 5  ;;  %v274_v63 = vshrl.u32 %v2970_v43, 16  ;;  %v280_v0 = vshll.u32 %v2973_v48, 16  ;;  %v272_v7 = vrot.slane %v270_v57, 5 }
  0x3d   : > { %v2990_v4 = vpack.c.b16 %v639_v54, %v638_v44  ;;  %v561_v5 = vsel %vm2879_vm3, %v556_v55, %v560_v42  ;;  %v566_v6 = vrot.slane %v565_v56, 4  ;;  %v381_v17 = vshrl.u32 %v2983_v58, 16 }
  0x3e   : > { %v646_v8 = vunpack.c.l.b16 %v561_v5  ;;  %v267_v9 = vor.u32 %v266_v60, %v263_v59  ;;  %v276_v13 = vrot.slane %v274_v63, 4  ;;  %v282_v14 = vrot.slane %v280_v0, 5 }
  0x3f   : > { %2390 = vmatmul.msk.bf16.gmra.mxu2 %vm668_vm4, %v2990_v4  ;;  %v571_v16 = vsel %vm2879_vm3, %v566_v6, %v570_v50  ;;  %v384_v20 = vshll.u32 %v2983_v58, 16  ;;  %v390_v21 = vshll.u32 %v2988_v3, 16  ;;  %v394_v27 = vshrl.u32 %v2988_v3, 16  ;;  %v3017_v50 = vld [vmem:[%s2852_s11 + $0x80] sm:$0x1] }
  0x40   : > { %v647_v22 = vunpack.c.l.b16 %v571_v16  ;;  %v268_v25 = vrot.slane %v267_v9, 4  ;;  %v277_v26 = vor.u32 %v276_v13, %v272_v7  ;;  %v383_v30 = vrot.slane %v381_v17, 4  ;;  %v3036_v16 = vld [vmem:[%s2852_s11 + $0xac] sm:$0xf]  ;;  %v3039_v17 = vld [vmem:[%s2852_s11 + $0xb0] sm:$0x1] }
  0x41   : > { %v386_v31 = vrot.slane %v384_v20, 5  ;;  %v392_v32 = vrot.slane %v390_v21, 5  ;;  %v400_v33 = vshll.u32 %v2995_v15, 16  ;;  %v396_v44 = vrot.slane %v394_v27, 4  ;;  %4037 = vst [vmem:[#allocation9_spill] sm:$0xff] %v3036_v16 }
  0x42   : > { %v3012_v40 = vpack.c.b16 %v647_v22, %v646_v8  ;;  %v273_v41 = vsel %vm2879_vm3, %v268_v25, %v272_v7  ;;  %v278_v42 = vrot.slane %v277_v26, 4  ;;  %v477_v52 = vshrl.u32 %v3006_v28, 16  ;;  %v3029_v8 = vld [vmem:[%s2852_s11 + $0xa8] sm:$0xf]  ;;  %4038 = vst [vmem:[#allocation10_spill] sm:$0xff] %v3039_v17 }
  0x43   : > { %v622_v45 = vunpack.c.l.b16 %v273_v41  ;;  %v387_v46 = vor.u32 %v386_v31, %v383_v30  ;;  %v402_v49 = vrot.slane %v400_v33, 5  ;;  %v397_v54 = vor.u32 %v396_v44, %v392_v32  ;;  %4036 = vst [vmem:[#allocation8_spill] sm:$0xff] %v3029_v8 }
  0x44   : > { %4035 = vst [vmem:[#allocation7_spill] sm:$0xff] %v3012_v40  ;;  %2394 = vmatmul.msk.bf16.gmra.mxu3 %vm668_vm4, %v3012_v40  ;;  %v283_v53 = vsel %vm2879_vm3, %v278_v42, %v282_v14  ;;  %v480_v55 = vshll.u32 %v3006_v28, 16  ;;  %v486_v56 = vshll.u32 %v3010_v34, 16  ;;  %v479_v60 = vrot.slane %v477_v52, 4  ;;  %v3053_v52 = vld [vmem:[%s2852_s11 + $0x18] sm:$0xf] }
  0x45   : > { %v623_v57 = vunpack.c.l.b16 %v283_v53  ;;  %v388_v59 = vrot.slane %v387_v46, 4  ;;  %v490_v63 = vshrl.u32 %v3010_v34, 16  ;;  %v398_v0 = vrot.slane %v397_v54, 4  ;;  %v3139_v40 = vld [vmem:[%s2852_s11 + $0x24] sm:$0xf] }
  0x46   : > { %v482_v5 = vrot.slane %v480_v55, 5  ;;  %v488_v6 = vrot.slane %v486_v56, 5  ;;  %v496_v7 = vshll.u32 %v3017_v50, 16  ;;  %v573_v30 = vshrl.u32 %v3029_v8, 16  ;;  %v3058_v56 = vld [vmem:[%s2852_s11 + $0x1c] sm:$0xf] }
  0x47   : > { %v3031_v9 = vpack.c.b16 %v623_v57, %v622_v45  ;;  %v393_v13 = vsel %vm2879_vm3, %v388_v59, %v392_v32  ;;  %v492_v14 = vrot.slane %v490_v63, 4  ;;  %v403_v20 = vsel %vm2879_vm3, %v398_v0, %v402_v49  ;;  %v3061_v57 = vld [vmem:[%s2852_s11 + $0x20] sm:$0x1] }
  0x48   : > { %v632_v21 = vunpack.c.l.b16 %v393_v13  ;;  %v483_v22 = vor.u32 %v482_v5, %v479_v60  ;;  %v498_v25 = vrot.slane %v496_v7, 5  ;;  %v633_v26 = vunpack.c.l.b16 %v403_v20 }
  0x49   : > { %2382 = vmatmul.msk.bf16.gmra.mxu0 %vm668_vm4, %v3031_v9  ;;  %v493_v27 = vor.u32 %v492_v14, %v488_v6  ;;  %v576_v31 = vshll.u32 %v3029_v8, 16  ;;  %v582_v33 = vshll.u32 %v3036_v16, 16  ;;  %v586_v41 = vshrl.u32 %v3036_v16, 16 }
  0x4a   : > { %v484_v32 = vrot.slane %v483_v22, 4  ;;  %v592_v42 = vshll.u32 %v3039_v17, 16  ;;  %v3050_v44 = vpack.c.b16 %v633_v26, %v632_v21  ;;  %v575_v46 = vrot.slane %v573_v30, 4  ;;  %v3073_v26 = vld [vmem:[%s2852_s11 + $0x54] sm:$0xf] }
  0x4b   : > { %v494_v45 = vrot.slane %v493_v27, 4  ;;  %v578_v49 = vrot.slane %v576_v31, 5  ;;  %v584_v54 = vrot.slane %v582_v33, 5  ;;  %v588_v55 = vrot.slane %v586_v41, 4  ;;  %v3117_v17 = vld [vmem:[%s2852_s11 + $0xb4] sm:$0xf] }
  0x4c   : > { %4039 = vst [vmem:[#allocation11_spill] sm:$0xff] %v3050_v44  ;;  %v489_v53 = vsel %vm2879_vm3, %v484_v32, %v488_v6  ;;  %2387 = vmatmul.msk.bf16.gmra.mxu1 %vm668_vm4, %v3050_v44  ;;  %v594_v0 = vrot.slane %v592_v42, 5  ;;  %v285_v6 = vshrl.u32 %v3053_v52, 16  ;;  %v288_v13 = vshll.u32 %v3053_v52, 16  ;;  %v3078_v32 = vld [vmem:[%s2852_s11 + $0x58] sm:$0xf] }
  0x4d   : > { %v499_v59 = vsel %vm2879_vm3, %v494_v45, %v498_v25  ;;  %v640_v60 = vunpack.c.l.b16 %v489_v53  ;;  %v579_v63 = vor.u32 %v578_v49, %v575_v46  ;;  %v589_v7 = vor.u32 %v588_v55, %v584_v54  ;;  %v3083_v46 = vld [vmem:[%s2852_s11 + $0x5c] sm:$0x1]  ;;  %4042 = vst [vmem:[#allocation14_spill] sm:$0xff] %v3117_v17 }
  0x4e   : > { %v641_v5 = vunpack.c.l.b16 %v499_v59  ;;  %v294_v20 = vshll.u32 %v3058_v56, 16  ;;  %v298_v21 = vshrl.u32 %v3058_v56, 16  ;;  %v304_v22 = vshll.u32 %v3061_v57, 16 }
  0x4f   : > { %v580_v14 = vrot.slane %v579_v63, 4  ;;  %v590_v27 = vrot.slane %v589_v7, 4  ;;  %v287_v30 = vrot.slane %v285_v6, 4  ;;  %v290_v31 = vrot.slane %v288_v13, 5  ;;  %v3093_v7 = vld [vmem:[%s2852_s11 + $0x84] sm:$0xf] }
  0x50   : > { %v3075_v25 = vpack.c.b16 %v641_v5, %v640_v60  ;;  %v296_v41 = vrot.slane %v294_v20, 5  ;;  %v300_v42 = vrot.slane %v298_v21, 4  ;;  %v306_v45 = vrot.slane %v304_v22, 5  ;;  %4040 = vst [vmem:[#allocation12_spill] sm:$0xff] %v3093_v7 }
  0x51   : > { %v585_v33 = vsel %vm2879_vm3, %v580_v14, %v584_v54  ;;  %v595_v49 = vsel %vm2879_vm3, %v590_v27, %v594_v0  ;;  %v291_v55 = vor.u32 %v290_v31, %v287_v30  ;;  %v405_v59 = vshrl.u32 %v3073_v26, 16  ;;  %v3100_v30 = vld [vmem:[%s2852_s11 + $0x88] sm:$0xf] }
  0x52   : > { %2391 = vmatmul.msk.bf16.gmra.mxu2 %vm668_vm4, %v3075_v25  ;;  %v648_v53 = vunpack.c.l.b16 %v585_v33  ;;  %v649_v60 = vunpack.c.l.b16 %v595_v49  ;;  %v301_v63 = vor.u32 %v300_v42, %v296_v41  ;;  %v408_v54 = vshll.u32 %v3073_v26, 16  ;;  %v3105_v49 = vld [vmem:[%s2852_s11 + $0x8c] sm:$0x1] }
  0x53   : > { %v414_v5 = vshll.u32 %v3078_v32, 16  ;;  %v292_v6 = vrot.slane %v291_v55, 4  ;;  %v407_v13 = vrot.slane %v405_v59, 4  ;;  %v418_v14 = vshrl.u32 %v3078_v32, 16 }
  0x54   : > { %v424_v0 = vshll.u32 %v3083_v46, 16  ;;  %v3097_v20 = vpack.c.b16 %v649_v60, %v648_v53  ;;  %v302_v21 = vrot.slane %v301_v63, 4  ;;  %v410_v22 = vrot.slane %v408_v54, 5 }
  0x55   : > { %v416_v27 = vrot.slane %v414_v5, 5  ;;  %v297_v31 = vsel %vm2879_vm3, %v292_v6, %v296_v41  ;;  %v420_v33 = vrot.slane %v418_v14, 4  ;;  %v501_v55 = vshrl.u32 %v3093_v7, 16 }
  0x56   : > { %4041 = vst [vmem:[#allocation13_spill] sm:$0xff] %v3097_v20  ;;  %v426_v42 = vrot.slane %v424_v0, 5  ;;  %2395 = vmatmul.msk.bf16.gmra.mxu3 %vm668_vm4, %v3097_v20  ;;  %v307_v53 = vsel %vm2879_vm3, %v302_v21, %v306_v45  ;;  %v624_v59 = vunpack.c.l.b16 %v297_v31  ;;  %v411_v60 = vor.u32 %v410_v22, %v407_v13  ;;  %v3122_v22 = vld [vmem:[%s2852_s11 + $0xb8] sm:$0xf] }
  0x57   : > { %v504_v63 = vshll.u32 %v3093_v7, 16  ;;  %v625_v54 = vunpack.c.l.b16 %v307_v53  ;;  %v421_v41 = vor.u32 %v420_v33, %v416_v27  ;;  %v503_v5 = vrot.slane %v501_v55, 4  ;;  %4043 = vst [vmem:[#allocation15_spill] sm:$0xff] %v3122_v22 }
  0x58   : > { %v510_v6 = vshll.u32 %v3100_v30, 16  ;;  %v412_v14 = vrot.slane %v411_v60, 4  ;;  %v514_v8 = vshrl.u32 %v3100_v30, 16  ;;  %v520_v20 = vshll.u32 %v3105_v49, 16  ;;  %v3127_v60 = vld [vmem:[%s2852_s11 + $0xbc] sm:$0x1] }
  0x59   : > { %v506_v0 = vrot.slane %v504_v63, 5  ;;  %v3119_v45 = vpack.c.b16 %v625_v54, %v624_v59  ;;  %v422_v21 = vrot.slane %v421_v41, 4  ;;  %4044 = vst [vmem:[#allocation16_spill] sm:$0xff] %v3127_v60  ;;  %v597_v54 = vshrl.u32 %v3117_v17, 16 }
  0x5a   : > { %v512_v13 = vrot.slane %v510_v6, 5  ;;  %v417_v31 = vsel %vm2879_vm3, %v412_v14, %v416_v27  ;;  %v516_v55 = vrot.slane %v514_v8, 4  ;;  %v522_v53 = vrot.slane %v520_v20, 5 }
  0x5b   : > { %v507_v33 = vor.u32 %v506_v0, %v503_v5  ;;  %2383 = vmatmul.msk.bf16.gmra.mxu0 %vm668_vm4, %v3119_v45  ;;  %v427_v59 = vsel %vm2879_vm3, %v422_v21, %v426_v42  ;;  %v634_v63 = vunpack.c.l.b16 %v417_v31  ;;  %v600_v41 = vshll.u32 %v3117_v17, 16 }
  0x5c   : > { %v635_v6 = vunpack.c.l.b16 %v427_v59  ;;  %v517_v5 = vor.u32 %v516_v55, %v512_v13  ;;  %v606_v8 = vshll.u32 %v3122_v22, 16  ;;  %v599_v20 = vrot.slane %v597_v54, 4 }
  0x5d   : > { %v508_v27 = vrot.slane %v507_v33, 4  ;;  %v602_v14 = vrot.slane %v600_v41, 5  ;;  %v610_v0 = vshrl.u32 %v3122_v22, 16  ;;  %v616_v16 = vshll.u32 %v3127_v60, 16  ;;  %v3146_v33 = vld [vmem:[%s2852_s11 + $0x28] sm:$0xf] }
  0x5e   : > { %v3141_v42 = vpack.c.b16 %v635_v6, %v634_v63  ;;  %v518_v31 = vrot.slane %v517_v5, 4  ;;  %v608_v59 = vrot.slane %v606_v8, 5  ;;  %v1054_v55 = vrot.slane %v2899_v2, 5 }
  0x5f   : > { %v513_v21 = vsel %vm2879_vm3, %v508_v27, %v512_v13  ;;  %v603_v54 = vor.u32 %v602_v14, %v599_v20  ;;  %v612_v41 = vrot.slane %v610_v0, 4  ;;  %v618_v6 = vrot.slane %v616_v16, 5 }
  0x60   : > { %4045 = vst [vmem:[#allocation17_spill] sm:$0xff] %v3141_v42  ;;  %v642_v17 = vunpack.c.l.b16 %v513_v21  ;;  %2388 = vmatmul.msk.bf16.gmra.mxu1 %vm668_vm4, %v3141_v42  ;;  %v523_v63 = vsel %vm2879_vm3, %v518_v31, %v522_v53  ;;  %v309_v13 = vshrl.u32 %v3139_v40, 16  ;;  %v312_v27 = vshll.u32 %v3139_v40, 16 }
  0x61   : > { %v643_v5 = vunpack.c.l.b16 %v523_v63  ;;  %v604_v8 = vrot.slane %v603_v54, 4  ;;  %v613_v60 = vor.u32 %v612_v41, %v608_v59  ;;  %v318_v2 = vshll.u32 %v3146_v33, 16  ;;  %v230_v54 = vld [vmem:[%s3986_s1 + $0xc] sm:$0x3]  ;;  %v231_v41 = vld [vmem:[%s3986_s1 + $0xe] sm:$0x3] }
  0x62   : > { %v311_v20 = vrot.slane %v309_v13, 4  ;;  %v314_v14 = vrot.slane %v312_v27, 5  ;;  %v322_v0 = vshrl.u32 %v3146_v33, 16  ;;  %v328_v21 = vshll.u32 %v3150_v39, 16 }
  0x63   : > { %v3161_v22 = vpack.c.b16 %v643_v5, %v642_v17  ;;  %v609_v16 = vsel %vm2879_vm3, %v604_v8, %v608_v59  ;;  %v614_v53 = vrot.slane %v613_v60, 4  ;;  %v320_v31 = vrot.slane %v318_v2, 5  ;;  %v229_v17 = vld [vmem:[%s3986_s1 + $0xa] sm:$0x3]  ;;  %v232_v60 = vld [vmem:[%s3986_s1 + $0x10] sm:$0x3] }
  0x64   : > { %v650_v63 = vunpack.c.l.b16 %v609_v16  ;;  %v315_v13 = vor.u32 %v314_v14, %v311_v20  ;;  %v324_v27 = vrot.slane %v322_v0, 4  ;;  %v330_v7 = vrot.slane %v328_v21, 5 }
  0x65   : > { %4046 = vst [vmem:[#allocation18_spill] sm:$0xff] %v3161_v22  ;;  %2392 = vmatmul.msk.bf16.gmra.mxu2 %vm668_vm4, %v3161_v22  ;;  %v619_v59 = vsel %vm2879_vm3, %v614_v53, %v618_v6  ;;  %v2477_v5 = vrot.slane %v2889_v61, 9  ;;  %v1051_v0 = vrot.slane %v2896_v1, 5  ;;  %v1814_v21 = vsel %vm717_vm0, %v230_v54, 0 }
  0x66   : > { %v651_v8 = vunpack.c.l.b16 %v619_v59  ;;  %v316_v2 = vrot.slane %v315_v13, 4  ;;  %v325_v20 = vor.u32 %v324_v27, %v320_v31  ;;  %v1968_v16 = vsel %vm717_vm0, %v231_v41, 0  ;;  %1823 = vmatpush.bf16.msra.mxu2 %v1814_v21  ;;  %v2621_v21 = vld [vmem:[%s2852_s11 + $0xc] sm:$0xff] }
  0x67   : > { %v1682_v22 = vsel %vm717_vm0, %v229_v17, 0  ;;  %v2106_v6 = vsel %vm717_vm0, %v232_v60, 0  ;;  %v1052_v27 = vsel %vm3182_vm7, %v2477_v5, %v1051_v0  ;;  %1977 = vmatpush.bf16.msra.mxu3 %v1968_v16  ;;  %v1053_v54 = vrot.slane %v1051_v0, 4 }
  0x68   : > { %v3191_v53 = vpack.c.b16 %v651_v8, %v650_v63  ;;  %v321_v61 = vsel %vm2879_vm3, %v316_v2, %v320_v31  ;;  %v326_v13 = vrot.slane %v325_v20, 4  ;;  %1691 = vmatpush.bf16.msra.mxu1 %v1682_v22  ;;  %2115 = vmatpush.bf16.msra.mxu0 %v2106_v6  ;;  %v2478_v41 = vrot.slane %v2963_v35, 9  ;;  %v2620_v22 = vld [vmem:[%s2852_s11] sm:$0xff]  ;;  %v3228_v6 = vld [vmem:[%s2852_s11 + $0x18] sm:$0xff] }
  0x69   : > { %v626_v1 = vunpack.c.l.b16 %v321_v61  ;;  %v1161_v31 = vunpack.c.l.b16 %v1052_v27  ;;  %v1058_v17 = vrot.slane %v2970_v43, 5  ;;  %v1061_v60 = vrot.slane %v2973_v48, 5 }
  0x6a   : > { %2396 = vmatmul.msk.bf16.gmra.mxu3 %vm668_vm4, %v3191_v53  ;;  %v331_v63 = vsel %vm2879_vm3, %v326_v13, %v330_v7  ;;  %v1055_v5 = vsel %vm3182_vm7, %v1053_v54, %v1054_v55  ;;  %v1065_v16 = vrot.slane %v3058_v56, 5  ;;  %v2479_v61 = vrot.slane %v3053_v52, 9 }
  0x6b   : > { %v627_v59 = vunpack.c.l.b16 %v331_v63  ;;  %v1162_v8 = vunpack.c.l.b16 %v1055_v5  ;;  %v1059_v35 = vsel %vm3182_vm7, %v2478_v41, %v1058_v17  ;;  %v1060_v2 = vrot.slane %v1058_v17, 4  ;;  %v3248_v41 = vld [vmem:[%s2852_s11 + $0x24] sm:$0xff] }
  0x6c   : > { %v1163_v7 = vunpack.c.l.b16 %v1059_v35  ;;  %v1067_v13 = vrot.slane %v1065_v16, 4  ;;  %v1068_v27 = vrot.slane %v3061_v57, 5  ;;  %v1072_v57 = vrot.slane %v3146_v33, 5 }
  0x6d   : > { %v3209_v20 = vpack.c.b16 %v627_v59, %v626_v1  ;;  %v1193_v0 = vpack.c.b16 %v1162_v8, %v1161_v31  ;;  %v1062_v43 = vsel %vm3182_vm7, %v1060_v2, %v1061_v60  ;;  %v2480_v63 = vrot.slane %v3139_v40, 9  ;;  %v3270_v8 = vld [vmem:[%s2852_s11 + $0x30] sm:$0xff] }
  0x6e   : > { %v1164_v48 = vunpack.c.l.b16 %v1062_v43  ;;  %v1069_v56 = vsel %vm3182_vm7, %v1067_v13, %v1068_v27  ;;  %v1074_v31 = vrot.slane %v1072_v57, 4  ;;  %v1075_v17 = vrot.slane %v3150_v39, 5  ;;  %v3298_v27 = vld [vmem:[%s2852_s11 + $0x3c] sm:$0xff] }
  0x6f   : > { %2384 = vmatmul.msk.bf16.gmra.mxu0 %vm668_vm4, %v3209_v20  ;;  %v1166_v54 = vunpack.c.l.b16 %v1069_v56  ;;  %v1073_v60 = vsel %vm3182_vm7, %v2480_v63, %v1072_v57  ;;  %v1079_v39 = vrot.slane %v2858_v11, 5  ;;  %v2481_v35 = vrot.slane %v2855_v10, 9 }
  0x70   : > { %2461 = vmatmul.msk.bf16.vlgmr.msrb.gmra.mxu1 %vm668_vm4, %v2620_v22  ;;  %v3216_v55 = vpack.c.b16 %v1164_v48, %v1163_v7  ;;  %v1076_v33 = vsel %vm3182_vm7, %v1074_v31, %v1075_v17  ;;  %v1167_v59 = vunpack.c.l.b16 %v1073_v60  ;;  %v1082_v7 = vrot.slane %v2861_v12, 5 }
  0x71   : > { %v1168_v5 = vunpack.c.l.b16 %v1076_v33  ;;  %v1081_v2 = vrot.slane %v1079_v39, 4  ;;  %v1086_v13 = vrot.slane %v2918_v24, 5  ;;  %v2482_v56 = vrot.slane %v2915_v23, 9 }
  0x73   : > { %v3262_v40 = vpack.c.b16 %v1168_v5, %v1167_v59  ;;  %v1083_v11 = vsel %vm3182_vm7, %v1081_v2, %v1082_v7  ;;  %v1087_v24 = vsel %vm3182_vm7, %v2482_v56, %v1086_v13  ;;  %v1093_v5 = vrot.slane %v2988_v3, 5 }
  0x74   : > { %v1171_v23 = vunpack.c.l.b16 %v1087_v24  ;;  %v2483_v7 = vrot.slane %v2983_v58, 9  ;;  %v1100_v24 = vrot.slane %v3078_v32, 5 }
  0x75   : > { %2493 = vmatmul.msk.bf16.vlgmr.msrb.gmra.mxu2 %vm668_vm4, %v1193_v0  ;;  %v1080_v0 = vsel %vm3182_vm7, %v2481_v35, %v1079_v39  ;;  %v3332_v35 = vld [vmem:[%s2852_s11 + $0x48] sm:$0xff] }
  0x76   : > { %v1169_v48 = vunpack.c.l.b16 %v1080_v0  ;;  %4051 = vst [vmem:[#allocation21_spill] sm:$0xff] %v3332_v35  ;;  %v1095_v0 = vrot.slane %v1093_v5, 4 }
  0x7a   : > { %2513 = vmatmul.msk.bf16.vlgmr.msrb.gmra.mxu3 %vm668_vm4, %v2621_v21 }
  0x7f   : > { %2529 = vmatmul.msk.bf16.vlgmr.msrb.gmra.mxu0 %vm668_vm4, %v3031_v9  ;;  %v1066_v9 = vsel %vm3182_vm7, %v2479_v61, %v1065_v16 }
  0x80   : > { %2462 = vmatmul.msk.bf16.gmra.mxu1 %vm668_vm4, %v2621_v21  ;;  %v1165_v1 = vunpack.c.l.b16 %v1066_v9  ;;  %v1170_v21 = vunpack.c.l.b16 %v1083_v11  ;;  %v1096_v11 = vrot.slane %v2995_v15, 5 }
  0x82   : > { %v3242_v52 = vpack.c.b16 %v1166_v54, %v1165_v1  ;;  %v3290_v12 = vpack.c.b16 %v1170_v21, %v1169_v48  ;;  %v1088_v1 = vrot.slane %v1086_v13, 4  ;;  %v1089_v54 = vrot.slane %v2923_v29, 5 }
  0x83   : > { %v1094_v21 = vsel %vm3182_vm7, %v2483_v7, %v1093_v5  ;;  %v1097_v13 = vsel %vm3182_vm7, %v1095_v0, %v1096_v11  ;;  %v2484_v5 = vrot.slane %v3073_v26, 9  ;;  %v1102_v7 = vrot.slane %v1100_v24, 4 }
  0x84   : > { %v1090_v63 = vsel %vm3182_vm7, %v1088_v1, %v1089_v54  ;;  %v1173_v56 = vunpack.c.l.b16 %v1094_v21  ;;  %v1174_v1 = vunpack.c.l.b16 %v1097_v13  ;;  %v1103_v0 = vrot.slane %v3083_v46, 5 }
  0x85   : > { %2494 = vmatmul.msk.bf16.gmra.mxu2 %vm668_vm4, %v3216_v55  ;;  %v1172_v60 = vunpack.c.l.b16 %v1090_v63  ;;  %v1101_v32 = vsel %vm3182_vm7, %v2484_v5, %v1100_v24  ;;  %v1107_v5 = vrot.slane %v2870_v19, 5 }
  0x86   : > { %v3356_v54 = vpack.c.b16 %v1174_v1, %v1173_v56  ;;  %v1104_v13 = vsel %vm3182_vm7, %v1102_v7, %v1103_v0  ;;  %v1175_v56 = vunpack.c.l.b16 %v1101_v32  ;;  %v2685_v32 = vld [vmem:[%s2852_s11 + $0x68] sm:$0x1] }
  0x87   : > { %v3322_v33 = vpack.c.b16 %v1172_v60, %v1171_v23  ;;  %v3366_v60 = vld [vmem:[%s2852_s11 + $0x54] sm:$0xff]  ;;  %v1176_v46 = vunpack.c.l.b16 %v1104_v13  ;;  %v1110_v13 = vrot.slane %v2685_v32, 5 }
  0x88   : > { %4054 = vst [vmem:[#allocation24_spill] sm:$0xff] %v3356_v54 }
  0x89   : > { %4055 = vst [vmem:[#allocation25_spill] sm:$0xff] %v3366_v60 }
  0x8a   : > { %2514 = vmatmul.msk.bf16.gmra.mxu3 %vm668_vm4, %v3228_v6 }
  0x8f   : > { %2530 = vmatmul.msk.bf16.gmra.mxu0 %vm668_vm4, %v3119_v45 }
  0x90   : > { %2463 = vmatmul.msk.bf16.gmra.mxu1 %vm668_vm4, %v3228_v6 }
  0x95   : > { %2495 = vmatmul.msk.bf16.gmra.mxu2 %vm668_vm4, %v3242_v52 }
  0x9a   : > { %2515 = vmatmul.msk.bf16.gmra.mxu3 %vm668_vm4, %v3248_v41 }
  0x9f   : > { %2531 = vmatmul.msk.bf16.gmra.mxu0 %vm668_vm4, %v3209_v20 }
  0xa0   : > { %2464 = vmatmul.msk.bf16.gmra.mxu1 %vm668_vm4, %v3248_v41 }
  0xa5   : > { %v3265_v22 = vpop.f32.mrf.mxu1  ;;  %2496 = vmatmul.msk.bf16.gmra.mxu2 %vm668_vm4, %v3262_v40 }
  0xaa   : > { %2516 = vmatmul.msk.bf16.gmra.mxu3 %vm668_vm4, %v3270_v8 }
  0xad   : > { %v3280_v43 = vpop.f32.mrf.mxu1 }
  0xaf   : > { %v3282_v16 = vpop.f32.mrf.mxu2  ;;  %2532 = vmatmul.msk.bf16.gmra.mxu0 %vm668_vm4, %v2891_v62 }
  0xb0   : > { %2465 = vmatmul.msk.bf16.gmra.mxu1 %vm668_vm4, %v3270_v8 }
  0xb2   : > { %v3288_v10 = vpop.f32.mrf.mxu0 }
  0xb3   : > { %v3292_v61 = vpop.f32.mrf.mxu3 }
  0xb4   : > { %4049 = vst [vmem:[#allocation19_spill] sm:$0xff] %v3292_v61 }
  0xb5   : > { %2497 = vmatmul.msk.bf16.gmra.mxu2 %vm668_vm4, %v3290_v12 }
  0xb7   : > { %v3300_v9 = vpop.f32.mrf.mxu1  ;;  %v3304_v57 = vpop.f32.mrf.mxu2 }
  0xba   : > { %2517 = vmatmul.msk.bf16.gmra.mxu3 %vm668_vm4, %v3298_v27  ;;  %v3312_v31 = vpop.f32.mrf.mxu0 }
  0xbb   : > { %v3314_v17 = vpop.f32.mrf.mxu3 }
  0xbc   : > { %4050 = vst [vmem:[#allocation20_spill] sm:$0xff] %v3314_v17 }
  0xbf   : > { %2533 = vmatmul.msk.bf16.gmra.mxu0 %vm668_vm4, %v2965_v37  ;;  %v3318_v29 = vpop.f32.mrf.mxu1 }
  0xc0   : > { %2466 = vmatmul.msk.bf16.gmra.mxu1 %vm668_vm4, %v3298_v27 }
  0xc2   : > { %v3324_v59 = vpop.f32.mrf.mxu2 }
  0xc5   : > { %2498 = vmatmul.msk.bf16.gmra.mxu2 %vm668_vm4, %v3322_v33 }
  0xc6   : > { %v3327_v39 = vpop.f32.mrf.mxu0 }
  0xc7   : > { %v3334_v2 = vpop.f32.mrf.mxu3 }
  0xc8   : > { %4052 = vst [vmem:[#allocation22_spill] sm:$0xff] %v3334_v2 }
  0xc9   : > { %v3338_v48 = vpop.f32.mrf.mxu1 }
  0xca   : > { %2518 = vmatmul.msk.bf16.gmra.mxu3 %vm668_vm4, %v3332_v35  ;;  %v3342_v3 = vpop.f32.mrf.mxu2 }
  0xce   : > { %v3348_v58 = vpop.f32.mrf.mxu0 }
  0xcf   : > { %2534 = vmatmul.msk.bf16.gmra.mxu0 %vm668_vm4, %v3050_v44  ;;  %v3352_v15 = vpop.f32.mrf.mxu3 }
  0xd0   : > { %4053 = vst [vmem:[#allocation23_spill] sm:$0xff] %v3352_v15  ;;  %2467 = vmatmul.msk.bf16.gmra.mxu1 %vm668_vm4, %v3332_v35  ;;  %v3401_v15 = vld [vmem:[%s2852_s11 + $0x60] sm:$0xff] }
  0xd1   : > { %v3359_v63 = vpop.f32.mrf.mxu1  ;;  %4059 = vst [vmem:[#allocation29_spill] sm:$0xff] %v3401_v15 }
  0xd5   : > { %v3361_v23 = vpop.f32.mrf.mxu2  ;;  %2499 = vmatmul.msk.bf16.gmra.mxu2 %vm668_vm4, %v3356_v54 }
  0xd8   : > { %v3370_v11 = vpop.f32.mrf.mxu0 }
  0xd9   : > { %v3372_v21 = vpop.f32.mrf.mxu3 }
  0xda   : > { %4056 = vst [vmem:[#allocation26_spill] sm:$0xff] %v3372_v21  ;;  %2519 = vmatmul.msk.bf16.gmra.mxu3 %vm668_vm4, %v3366_v60  ;;  %v3388_v21 = vpack.c.b16 %v1176_v46, %v1175_v56 }
  0xdc   : > { %4057 = vst [vmem:[#allocation27_spill] sm:$0xff] %v3388_v21 }
  0xdd   : > { %v3380_v26 = vpop.f32.mrf.mxu1  ;;  %v3382_v1 = vpop.f32.mrf.mxu2 }
  0xdf   : > { %2535 = vmatmul.msk.bf16.gmra.mxu0 %vm668_vm4, %v3141_v42  ;;  %v2686_v42 = vld [vmem:[%s2852_s11 + $0x60] sm:$0xf] }
  0xe0   : > { %2468 = vmatmul.msk.bf16.gmra.mxu1 %vm668_vm4, %v3366_v60  ;;  %v3390_v24 = vpop.f32.mrf.mxu0  ;;  %v2485_v2 = vrot.slane %v2686_v42, 9  ;;  %v1109_v60 = vrot.slane %v1107_v5, 4 }
  0xe1   : > { %v3393_v7 = vpop.f32.mrf.mxu3 }
  0xe2   : > { %4058 = vst [vmem:[#allocation28_spill] sm:$0xff] %v3393_v7  ;;  %v1108_v19 = vsel %vm3182_vm7, %v2485_v2, %v1107_v5  ;;  %v1111_v46 = vsel %vm3182_vm7, %v1109_v60, %v1110_v13  ;;  %v1114_v60 = vrot.slane %v2938_v47, 5 }
  0xe3   : > { %v1177_v17 = vunpack.c.l.b16 %v1108_v19  ;;  %v1178_v42 = vunpack.c.l.b16 %v1111_v46  ;;  %v3434_v19 = vld [vmem:[%s2852_s11 + $0x6c] sm:$0xff] }
  0xe5   : > { %2500 = vmatmul.msk.bf16.gmra.mxu2 %vm668_vm4, %v3388_v21  ;;  %v3397_v0 = vpop.f32.mrf.mxu1  ;;  %v3423_v2 = vpack.c.b16 %v1178_v42, %v1177_v17  ;;  %v1116_v17 = vrot.slane %v1114_v60, 4 }
  0xe7   : > { %4061 = vst [vmem:[#allocation31_spill] sm:$0xff] %v3423_v2 }
  0xe8   : > { %v3404_v56 = vpop.f32.mrf.mxu2 }
  0xea   : > { %2520 = vmatmul.msk.bf16.gmra.mxu3 %vm668_vm4, %v3401_v15 }
  0xec   : > { %v3412_v7 = vpop.f32.mrf.mxu0 }
  0xed   : > { %v3414_v32 = vpop.f32.mrf.mxu3  ;;  %v950_v21 = vpop.f32.mrf.mxu1 }
  0xee   : > { %4060 = vst [vmem:[#allocation30_spill] sm:$0xff] %v3414_v32  ;;  %v951_v54 = vadd.f32 %v950_v21, %v3288_v10  ;;  %v1117_v21 = vrot.slane %v2945_v51, 5  ;;  %v2486_v32 = vrot.slane %v2931_v38, 9 }
  0xef   : > { %2536 = vmatmul.msk.bf16.gmra.mxu0 %vm668_vm4, %v2910_v18 }
  0xf0   : > { %v3419_v44 = vpop.f32.mrf.mxu2  ;;  %2469 = vmatmul.msk.bf16.gmra.mxu1 %vm668_vm4, %v3401_v15  ;;  %v1115_v47 = vsel %vm3182_vm7, %v2486_v32, %v1114_v60 }
  0xf1   : > { %v1179_v61 = vunpack.c.l.b16 %v1115_v47 }
  0xf4   : > { %v3426_v5 = vpop.f32.mrf.mxu0 }
  0xf5   : > { %v3428_v13 = vpop.f32.mrf.mxu3  ;;  %2501 = vmatmul.msk.bf16.gmra.mxu2 %vm668_vm4, %v3423_v2  ;;  %v952_v10 = vpop.f32.mrf.mxu1 }
  0xf6   : > { %4062 = vst [vmem:[#allocation32_spill] sm:$0xff] %v3428_v13  ;;  %v953_v46 = vadd.f32 %v952_v10, %v3312_v31  ;;  %v1118_v13 = vsel %vm3182_vm7, %v1116_v17, %v1117_v21  ;;  %v1121_v21 = vrot.slane %v3010_v34, 5 }
  0xf7   : > { %v1180_v35 = vunpack.c.l.b16 %v1118_v13  ;;  %v1124_v13 = vrot.slane %v3017_v50, 5 }
  0xf8   : > { %v1269_v42 = vpop.f32.mrf.mxu2 }
  0xf9   : > { %v1349_v18 = vadd.f32 %v1269_v42, %v951_v54  ;;  %v3451_v10 = vpack.c.b16 %v1180_v35, %v1179_v61  ;;  %v3458_v42 = vld [vmem:[%s2852_s11 + $0x78] sm:$0xff] }
  0xfa   : > { %2521 = vmatmul.msk.bf16.gmra.mxu3 %vm668_vm4, %v3434_v19 }
  0xfc   : > { %v1555_v2 = vpop.f32.mrf.mxu0 }
  0xfd   : > { %v1401_v51 = vpop.f32.mrf.mxu3  ;;  %v955_v15 = vpop.f32.mrf.mxu1 }
  0xfe   : > { %v1481_v31 = vadd.f32 %v1401_v51, %v1349_v18  ;;  %v956_v38 = vadd.f32 %v955_v15, %v3327_v39 }
  0xff   : > { %2537 = vmatmul.msk.bf16.gmra.mxu0 %vm668_vm4, %v2990_v4 }
 0x100   : > { %v1271_v54 = vpop.f32.mrf.mxu2  ;;  %2470 = vmatmul.msk.bf16.gmra.mxu1 %vm668_vm4, %v3434_v19  ;;  %v3449_v32 = vadd.f32 %v1555_v2, %v1481_v31  ;;  %v2487_v2 = vrot.slane %v3006_v28, 9 }
 0x101   : > { %v1350_v60 = vadd.f32 %v1271_v54, %v953_v46  ;;  %v1123_v46 = vrot.slane %v1121_v21, 4 }
 0x102   : > { %v1122_v50 = vsel %vm3182_vm7, %v2487_v2, %v1121_v21 }
 0x103   : > { %v1125_v51 = vsel %vm3182_vm7, %v1123_v46, %v1124_v13  ;;  %v1131_v46 = vrot.slane %v3105_v49, 5 }
 0x104   : > { %v1557_v17 = vpop.f32.mrf.mxu0 }
 0x105   : > { %v1403_v18 = vpop.f32.mrf.mxu3  ;;  %2502 = vmatmul.msk.bf16.gmra.mxu2 %vm668_vm4, %v3451_v10  ;;  %v957_v39 = vpop.f32.mrf.mxu1 }
 0x106   : > { %v1482_v15 = vadd.f32 %v1403_v18, %v1350_v60  ;;  %v958_v47 = vadd.f32 %v957_v39, %v3348_v58  ;;  %v1181_v58 = vunpack.c.l.b16 %v1122_v50  ;;  %v1182_v18 = vunpack.c.l.b16 %v1125_v51  ;;  %v3484_v50 = vld [vmem:[%s2852_s11 + $0x84] sm:$0xff] }
 0x108   : > { %v1274_v61 = vpop.f32.mrf.mxu2  ;;  %v3462_v35 = vadd.f32 %v1557_v17, %v1482_v15  ;;  %v3477_v13 = vpack.c.b16 %v1182_v18, %v1181_v58  ;;  %v1128_v15 = vrot.slane %v3100_v30, 5 }
 0x109   : > { %v1351_v34 = vadd.f32 %v1274_v61, %v956_v38 }
 0x10a   : > { %2522 = vmatmul.msk.bf16.gmra.mxu3 %vm668_vm4, %v3458_v42 }
 0x10c   : > { %v1560_v31 = vpop.f32.mrf.mxu0 }
 0x10d   : > { %v1406_v54 = vpop.f32.mrf.mxu3  ;;  %v960_v60 = vpop.f32.mrf.mxu1 }
 0x10e   : > { %v1483_v28 = vadd.f32 %v1406_v54, %v1351_v34  ;;  %v961_v17 = vadd.f32 %v960_v60, %v3370_v11 }
 0x10f   : > { %2538 = vmatmul.msk.bf16.gmra.mxu0 %vm668_vm4, %v3075_v25 }
 0x110   : > { %v1276_v38 = vpop.f32.mrf.mxu2  ;;  %2471 = vmatmul.msk.bf16.gmra.mxu1 %vm668_vm4, %v3458_v42  ;;  %v3475_v21 = vadd.f32 %v1560_v31, %v1483_v28  ;;  %v4063_v31 = vld [vmem:[#allocation12_spill] sm:$0xff] }
 0x111   : > { %v1352_v39 = vadd.f32 %v1276_v38, %v958_v47  ;;  %v2488_v54 = vrot.slane %v4063_v31, 9  ;;  %v1130_v47 = vrot.slane %v1128_v15, 4 }
 0x113   : > { %v1129_v49 = vsel %vm3182_vm7, %v2488_v54, %v1128_v15  ;;  %v1132_v18 = vsel %vm3182_vm7, %v1130_v47, %v1131_v46  ;;  %v2687_v54 = vld [vmem:[%s2852_s11 + $0x94] sm:$0xf] }
 0x114   : > { %v1562_v2 = vpop.f32.mrf.mxu0  ;;  %v1135_v47 = vrot.slane %v2687_v54, 5 }
 0x115   : > { %v1408_v61 = vpop.f32.mrf.mxu3  ;;  %2503 = vmatmul.msk.bf16.gmra.mxu2 %vm668_vm4, %v3477_v13  ;;  %v962_v11 = vpop.f32.mrf.mxu1 }
 0x116   : > { %v1484_v34 = vadd.f32 %v1408_v61, %v1352_v39  ;;  %v963_v51 = vadd.f32 %v962_v11, %v3390_v24  ;;  %v1183_v39 = vunpack.c.l.b16 %v1129_v49  ;;  %v1184_v61 = vunpack.c.l.b16 %v1132_v18 }
 0x118   : > { %v1279_v60 = vpop.f32.mrf.mxu2  ;;  %v3488_v58 = vadd.f32 %v1562_v2, %v1484_v34  ;;  %v3503_v31 = vpack.c.b16 %v1184_v61, %v1183_v39 }
 0x119   : > { %v1353_v30 = vadd.f32 %v1279_v60, %v961_v17  ;;  %v4065_v17 = vld [vmem:[#allocation18_spill] sm:$0xff] }
 0x11a   : > { %4064 = vst [vmem:[#allocation12_spill] sm:$0xff] %v3488_v58  ;;  %2523 = vmatmul.msk.bf16.gmra.mxu3 %vm668_vm4, %v3484_v50 }
 0x11b   : > { %4067 = vst [vmem:[#allocation34_spill] sm:$0xff] %v3503_v31 }
 0x11c   : > { %v1565_v28 = vpop.f32.mrf.mxu0 }
 0x11d   : > { %v1411_v24 = vpop.f32.mrf.mxu3  ;;  %v965_v38 = vpop.f32.mrf.mxu1 }
 0x11e   : > { %v1485_v11 = vadd.f32 %v1411_v24, %v1353_v30  ;;  %v966_v2 = vadd.f32 %v965_v38, %v3412_v7  ;;  %v2688_v30 = vld [vmem:[%s2852_s11 + $0x98] sm:$0x1]  ;;  %v3510_v38 = vld [vmem:[%s2852_s11 + $0x90] sm:$0xff] }
 0x11f   : > { %2539 = vmatmul.msk.bf16.gmra.mxu0 %vm668_vm4, %v4065_v17  ;;  %v1138_v49 = vrot.slane %v2688_v30, 5  ;;  %4068 = vst [vmem:[#allocation35_spill] sm:$0xff] %v3510_v38 }
 0x120   : > { %v1281_v34 = vpop.f32.mrf.mxu2  ;;  %2472 = vmatmul.msk.bf16.gmra.mxu1 %vm668_vm4, %v3484_v50  ;;  %v3501_v15 = vadd.f32 %v1565_v28, %v1485_v11  ;;  %v2689_v28 = vld [vmem:[%s2852_s11 + $0x90] sm:$0xf] }
 0x121   : > { %v1354_v46 = vadd.f32 %v1281_v34, %v963_v51  ;;  %v2489_v11 = vrot.slane %v2689_v28, 9  ;;  %v1137_v51 = vrot.slane %v1135_v47, 4 }
 0x122   : > { %4066 = vst [vmem:[#allocation33_spill] sm:$0xff] %v3501_v15 }
 0x123   : > { %v1136_v54 = vsel %vm3182_vm7, %v2489_v11, %v1135_v47  ;;  %v2690_v11 = vld [vmem:[%s2852_s11 + $0xa0] sm:$0xf] }
 0x124   : > { %v1567_v60 = vpop.f32.mrf.mxu0 }
 0x125   : > { %v1413_v7 = vpop.f32.mrf.mxu3  ;;  %2504 = vmatmul.msk.bf16.gmra.mxu2 %vm668_vm4, %v3503_v31  ;;  %v967_v18 = vpop.f32.mrf.mxu1  ;;  %v2692_v31 = vld [vmem:[%s2852_s11 + $0x9c] sm:$0xf] }
 0x126   : > { %v1486_v24 = vadd.f32 %v1413_v7, %v1354_v46  ;;  %v968_v58 = vadd.f32 %v967_v18, %v3426_v5  ;;  %v1139_v46 = vsel %vm3182_vm7, %v1137_v51, %v1138_v49  ;;  %v1185_v18 = vunpack.c.l.b16 %v1136_v54 }
 0x127   : > { %v1186_v28 = vunpack.c.l.b16 %v1139_v46  ;;  %v1142_v51 = vrot.slane %v2690_v11, 5  ;;  %v2691_v46 = vld [vmem:[%s2852_s11 + $0xa4] sm:$0x1] }
 0x128   : > { %v1284_v39 = vpop.f32.mrf.mxu2  ;;  %v3514_v61 = vadd.f32 %v1567_v60, %v1486_v24  ;;  %v4070_v60 = vld [vmem:[#allocation6_spill] sm:$0xff] }
 0x129   : > { %v1355_v34 = vadd.f32 %v1284_v39, %v966_v2  ;;  %v3528_v49 = vpack.c.b16 %v1186_v28, %v1185_v18 }
 0x12a   : > { %4069 = vst [vmem:[#allocation36_spill] sm:$0xff] %v3514_v61  ;;  %2524 = vmatmul.msk.bf16.gmra.mxu3 %vm668_vm4, %v3510_v38 }
 0x12b   : > { %4072 = vst [vmem:[#allocation38_spill] sm:$0xff] %v3528_v49 }
 0x12c   : > { %v1570_v30 = vpop.f32.mrf.mxu0 }
 0x12d   : > { %v1416_v7 = vpop.f32.mrf.mxu3  ;;  %v970_v5 = vpop.f32.mrf.mxu1 }
 0x12e   : > { %v1487_v15 = vadd.f32 %v1416_v7, %v1355_v34  ;;  %v1145_v7 = vrot.slane %v2691_v46, 5 }
 0x12f   : > { %2540 = vmatmul.msk.bf16.gmra.mxu0 %vm668_vm4, %v4070_v60  ;;  %v3535_v60 = vld [vmem:[%s2852_s11 + $0x9c] sm:$0xff] }
 0x130   : > { %v1286_v2 = vpop.f32.mrf.mxu2  ;;  %2473 = vmatmul.msk.bf16.gmra.mxu1 %vm668_vm4, %v3510_v38  ;;  %v3526_v47 = vadd.f32 %v1570_v30, %v1487_v15  ;;  %4073 = vst [vmem:[#allocation39_spill] sm:$0xff] %v3535_v60  ;;  %v2490_v38 = vrot.slane %v2692_v31, 9  ;;  %v1144_v15 = vrot.slane %v1142_v51, 4 }
 0x131   : > { %v1356_v24 = vadd.f32 %v1286_v2, %v968_v58  ;;  %v971_v58 = vadd.f32 %v970_v5, %v3265_v22  ;;  %v4075_v5 = vld [vmem:[#allocation7_spill] sm:$0xff] }
 0x132   : > { %4071 = vst [vmem:[#allocation37_spill] sm:$0xff] %v3526_v47  ;;  %v1143_v2 = vsel %vm3182_vm7, %v2490_v38, %v1142_v51 }
 0x133   : > { %v1187_v31 = vunpack.c.l.b16 %v1143_v2 }
 0x134   : > { %v1572_v39 = vpop.f32.mrf.mxu0 }
 0x135   : > { %v1418_v54 = vpop.f32.mrf.mxu3  ;;  %2505 = vmatmul.msk.bf16.gmra.mxu2 %vm668_vm4, %v3528_v49  ;;  %v972_v34 = vpop.f32.mrf.mxu1 }
 0x136   : > { %v1488_v61 = vadd.f32 %v1418_v54, %v1356_v24  ;;  %v1146_v24 = vsel %vm3182_vm7, %v1144_v15, %v1145_v7  ;;  %v4078_v15 = vld [vmem:[#allocation9_spill] sm:$0xff] }
 0x137   : > { %v1188_v47 = vunpack.c.l.b16 %v1146_v24  ;;  %v4079_v24 = vld [vmem:[#allocation10_spill] sm:$0xff] }
 0x138   : > { %v1289_v30 = vpop.f32.mrf.mxu2  ;;  %v3539_v18 = vadd.f32 %v1572_v39, %v1488_v61  ;;  %v973_v61 = vadd.f32 %v972_v34, %v3280_v43  ;;  %v3561_v34 = vld [vmem:[%s2852_s11 + $0xa8] sm:$0xff] }
 0x139   : > { %v1357_v28 = vadd.f32 %v1289_v30, %v971_v58  ;;  %v3554_v7 = vpack.c.b16 %v1188_v47, %v1187_v31  ;;  %v1149_v58 = vrot.slane %v4078_v15, 5  ;;  %4080 = vst [vmem:[#allocation9_spill] sm:$0xff] %v3561_v34 }
 0x13a   : > { %4074 = vst [vmem:[#allocation40_spill] sm:$0xff] %v3539_v18  ;;  %2525 = vmatmul.msk.bf16.gmra.mxu3 %vm668_vm4, %v3535_v60  ;;  %v4081_v18 = vld [vmem:[#allocation8_spill] sm:$0xff] }
 0x13b   : > { %4077 = vst [vmem:[#allocation42_spill] sm:$0xff] %v3554_v7 }
 0x13c   : > { %v1575_v11 = vpop.f32.mrf.mxu0 }
 0x13d   : > { %v1421_v54 = vpop.f32.mrf.mxu3  ;;  %v975_v46 = vpop.f32.mrf.mxu1 }
 0x13e   : > { %v1489_v22 = vadd.f32 %v1421_v54, %v1357_v28  ;;  %v1152_v54 = vrot.slane %v4079_v24, 5 }
 0x13f   : > { %2541 = vmatmul.msk.bf16.gmra.mxu0 %vm668_vm4, %v4075_v5  ;;  %v2491_v5 = vrot.slane %v4081_v18, 9 }
 0x140   : > { %v1291_v39 = vpop.f32.mrf.mxu2  ;;  %2474 = vmatmul.msk.bf16.gmra.mxu1 %vm668_vm4, %v3535_v60  ;;  %v3552_v38 = vadd.f32 %v1575_v11, %v1489_v22  ;;  %v1151_v11 = vrot.slane %v1149_v58, 4  ;;  %v976_v22 = vadd.f32 %v975_v46, %v3300_v9 }
 0x141   : > { %v1358_v51 = vadd.f32 %v1291_v39, %v973_v61  ;;  %v1150_v39 = vsel %vm3182_vm7, %v2491_v5, %v1149_v58  ;;  %v3579_v5 = vld [vmem:[%s2852_s11 + $0xc0] sm:$0xf] }
 0x142   : > { %4076 = vst [vmem:[#allocation41_spill] sm:$0xff] %v3552_v38  ;;  %v1189_v24 = vunpack.c.l.b16 %v1150_v39  ;;  %v4083_v38 = vld [vmem:[#allocation13_spill] sm:$0xff]  ;;  %v1514_v39 = vshrl.u32 %v3579_v5, 16 }
 0x143   : > { %4084 = vst [vmem:[#allocation8_spill] sm:$0xff] %v3579_v5 }
 0x144   : > { %v1577_v30 = vpop.f32.mrf.mxu0 }
 0x145   : > { %v1423_v2 = vpop.f32.mrf.mxu3  ;;  %2506 = vmatmul.msk.bf16.gmra.mxu2 %vm668_vm4, %v3554_v7  ;;  %v977_v28 = vpop.f32.mrf.mxu1 }
 0x146   : > { %v1490_v43 = vadd.f32 %v1423_v2, %v1358_v51  ;;  %v1153_v51 = vsel %vm3182_vm7, %v1151_v11, %v1152_v54 }
 0x147   : > { %v1190_v9 = vunpack.c.l.b16 %v1153_v51 }
 0x148   : > { %v1294_v47 = vpop.f32.mrf.mxu2  ;;  %v3565_v31 = vadd.f32 %v1577_v30, %v1490_v43  ;;  %v978_v30 = vadd.f32 %v977_v28, %v3318_v29  ;;  %v1517_v29 = vshll.u32 %v3579_v5, 16 }
 0x149   : > { %v1359_v61 = vadd.f32 %v1294_v47, %v976_v22  ;;  %v3583_v11 = vpack.c.b16 %v1190_v9, %v1189_v24  ;;  %v3586_v22 = vld [vmem:[%s2852_s11 + $0xc4] sm:$0xf]  ;;  %v4088_v47 = vld [vmem:[#allocation15_spill] sm:$0xff]  ;;  %v4089_v24 = vld [vmem:[#allocation16_spill] sm:$0xff] }
 0x14a   : > { %4082 = vst [vmem:[#allocation10_spill] sm:$0xff] %v3565_v31  ;;  %2526 = vmatmul.msk.bf16.gmra.mxu3 %vm668_vm4, %v3561_v34  ;;  %v1523_v28 = vshll.u32 %v3586_v22, 16  ;;  %v1159_v9 = vrot.slane %v4089_v24, 5  ;;  %v1519_v7 = vrot.slane %v1517_v29, 5 }
 0x14b   : > { %4086 = vst [vmem:[#allocation44_spill] sm:$0xff] %v3583_v11 }
 0x14c   : > { %v1580_v15 = vpop.f32.mrf.mxu0  ;;  %4087 = vst [vmem:[#allocation45_spill] sm:$0xff] %v3586_v22 }
 0x14d   : > { %v1426_v18 = vpop.f32.mrf.mxu3  ;;  %v980_v2 = vpop.f32.mrf.mxu1 }
 0x14e   : > { %v1491_v46 = vadd.f32 %v1426_v18, %v1359_v61  ;;  %v1156_v61 = vrot.slane %v4088_v47, 5  ;;  %v1527_v18 = vshrl.u32 %v3586_v22, 16  ;;  %v981_v5 = vadd.f32 %v980_v2, %v3338_v48 }
 0x14f   : > { %2542 = vmatmul.msk.bf16.gmra.mxu0 %vm668_vm4, %v4083_v38  ;;  %v1516_v38 = vrot.slane %v1514_v39, 4  ;;  %v1525_v22 = vrot.slane %v1523_v28, 5 }
 0x150   : > { %v1296_v43 = vpop.f32.mrf.mxu2  ;;  %2475 = vmatmul.msk.bf16.gmra.mxu1 %vm668_vm4, %v3561_v34  ;;  %v3581_v58 = vadd.f32 %v1580_v15, %v1491_v46  ;;  %v1529_v60 = vrot.slane %v1527_v18, 4 }
 0x151   : > { %v1360_v54 = vadd.f32 %v1296_v43, %v978_v30  ;;  %v3597_v30 = vld [vmem:[%s2852_s11 + $0xb4] sm:$0xff]  ;;  %v4090_v43 = vld [vmem:[#allocation14_spill] sm:$0xff]  ;;  %v1520_v2 = vor.u32 %v1519_v7, %v1516_v38 }
 0x152   : > { %4085 = vst [vmem:[#allocation43_spill] sm:$0xff] %v3581_v58  ;;  %v2492_v47 = vrot.slane %v4090_v43, 9  ;;  %v1158_v58 = vrot.slane %v1156_v61, 4  ;;  %v1530_v39 = vor.u32 %v1529_v60, %v1525_v22 }
 0x154   : > { %v1582_v51 = vpop.f32.mrf.mxu0  ;;  %v1531_v38 = vrot.slane %v1530_v39, 4 }
 0x155   : > { %v1428_v31 = vpop.f32.mrf.mxu3  ;;  %2507 = vmatmul.msk.bf16.gmra.mxu2 %vm668_vm4, %v3583_v11  ;;  %v982_v15 = vpop.f32.mrf.mxu1  ;;  %v3604_v11 = vld [vmem:[%s2852_s11 + $0xc8] sm:$0x1] }
 0x156   : > { %v1492_v46 = vadd.f32 %v1428_v31, %v1360_v54  ;;  %v1157_v31 = vsel %vm3182_vm7, %v2492_v47, %v1156_v61  ;;  %v1160_v54 = vsel %vm3182_vm7, %v1158_v58, %v1159_v9  ;;  %v1533_v29 = vshll.u32 %v3604_v11, 16 }
 0x157   : > { %v1191_v18 = vunpack.c.l.b16 %v1157_v31  ;;  %v983_v24 = vadd.f32 %v982_v15, %v3359_v63  ;;  %v1521_v58 = vrot.slane %v1520_v2, 4 }
 0x158   : > { %v1299_v34 = vpop.f32.mrf.mxu2  ;;  %v3601_v49 = vadd.f32 %v1582_v51, %v1492_v46  ;;  %v1535_v60 = vrot.slane %v1533_v29, 5 }
 0x159   : > { %v1361_v17 = vadd.f32 %v1299_v34, %v981_v5  ;;  %v1192_v34 = vunpack.c.l.b16 %v1160_v54  ;;  %v3629_v54 = vld [vmem:[%s2852_s11 + $0xc0] sm:$0xff] }
 0x15a   : > { %2527 = vmatmul.msk.bf16.gmra.mxu3 %vm668_vm4, %v3597_v30  ;;  %v1536_v63 = vsel %vm2879_vm3, %v1531_v38, %v1535_v60 }
 0x15b   : > { %v3620_v46 = vpack.c.b16 %v1192_v34, %v1191_v18  ;;  %v1538_v39 = vunpack.c.l.b16 %v1536_v63 }
 0x15c   : > { %v1585_v48 = vpop.f32.mrf.mxu0 }
 0x15d   : > { %v1431_v28 = vpop.f32.mrf.mxu3  ;;  %v985_v51 = vpop.f32.mrf.mxu1 }
 0x15e   : > { %v1493_v5 = vadd.f32 %v1431_v28, %v1361_v17  ;;  %v1526_v17 = vsel %vm2879_vm3, %v1521_v58, %v1525_v22 }
 0x15f   : > { %2543 = vmatmul.msk.bf16.gmra.mxu0 %vm668_vm4, %v3191_v53  ;;  %v1537_v2 = vunpack.c.l.b16 %v1526_v17 }
 0x160   : > { %v1301_v61 = vpop.f32.mrf.mxu2  ;;  %2476 = vmatmul.msk.bf16.gmra.mxu1 %vm668_vm4, %v3597_v30  ;;  %v3618_v7 = vadd.f32 %v1585_v48, %v1493_v5  ;;  %v986_v48 = vadd.f32 %v985_v51, %v3380_v26 }
 0x161   : > { %v1362_v9 = vadd.f32 %v1301_v61, %v983_v24  ;;  %v3636_v22 = vpack.c.b16 %v1538_v39, %v1537_v2 }
 0x164   : > { %v1587_v43 = vpop.f32.mrf.mxu0 }
 0x165   : > { %v1433_v15 = vpop.f32.mrf.mxu3  ;;  %2508 = vmatmul.msk.bf16.gmra.mxu2 %vm668_vm4, %v3620_v46  ;;  %v987_v47 = vpop.f32.mrf.mxu1 }
 0x166   : > { %v1494_v31 = vadd.f32 %v1433_v15, %v1362_v9  ;;  %v988_v26 = vadd.f32 %v987_v47, %v3397_v0 }
 0x168   : > { %v1304_v29 = vpop.f32.mrf.mxu2  ;;  %v3632_v28 = vadd.f32 %v1587_v43, %v1494_v31 }
 0x169   : > { %v1363_v18 = vadd.f32 %v1304_v29, %v986_v48 }
 0x16a   : > { %2528 = vmatmul.msk.bf16.gmra.mxu3 %vm668_vm4, %v3629_v54 }
 0x16c   : > { %v1590_v34 = vpop.f32.mrf.mxu0 }
 0x16d   : > { %v1436_v5 = vpop.f32.mrf.mxu3  ;;  %v990_v24 = vpop.f32.mrf.mxu1 }
 0x16e   : > { %v1495_v61 = vadd.f32 %v1436_v5, %v1363_v18  ;;  %v991_v63 = vadd.f32 %v990_v24, %v3282_v16 }
 0x16f   : > { %2544 = vmatmul.msk.bf16.gmra.mxu0 %vm668_vm4, %v3636_v22 }
 0x170   : > { %v1306_v51 = vpop.f32.mrf.mxu2  ;;  %2546 = vmatmul.msk.bf16.vlgmr.msra.gmra.mxu1 %vm668_vm4, %v3216_v55  ;;  %v3643_v58 = vadd.f32 %v1590_v34, %v1495_v61 }
 0x171   : > { %v1364_v38 = vadd.f32 %v1306_v51, %v988_v26 }
 0x174   : > { %v1592_v60 = vpop.f32.mrf.mxu0 }
 0x175   : > { %v1438_v9 = vpop.f32.mrf.mxu3  ;;  %2566 = vmatmul.msk.bf16.vlgmr.msra.gmra.mxu2 %vm668_vm4, %v3228_v6  ;;  %v992_v43 = vpop.f32.mrf.mxu1 }
 0x176   : > { %v1496_v17 = vadd.f32 %v1438_v9, %v1364_v38  ;;  %v993_v6 = vadd.f32 %v992_v43, %v3304_v57 }
 0x178   : > { %v1309_v15 = vpop.f32.mrf.mxu2  ;;  %v3648_v31 = vadd.f32 %v1592_v60, %v1496_v17 }
 0x179   : > { %v1365_v0 = vadd.f32 %v1309_v15, %v991_v63 }
 0x17a   : > { %2582 = vmatmul.msk.bf16.vlgmr.msra.gmra.mxu3 %vm668_vm4, %v3119_v45 }
 0x17c   : > { %v1595_v55 = vpop.f32.mrf.mxu0 }
 0x17d   : > { %v1441_v47 = vpop.f32.mrf.mxu3  ;;  %v995_v48 = vpop.f32.mrf.mxu1 }
 0x17e   : > { %v1497_v2 = vadd.f32 %v1441_v47, %v1365_v0  ;;  %v996_v24 = vadd.f32 %v995_v48, %v3324_v59 }
 0x17f   : > { %2599 = vmatmul.msk.bf16.vlgmr.msra.gmra.mxu0 %vm668_vm4, %v3242_v52 }
 0x180   : > { %v1311_v39 = vpop.f32.mrf.mxu2  ;;  %2547 = vmatmul.msk.bf16.gmra.mxu1 %vm668_vm4, %v3242_v52  ;;  %v3657_v16 = vadd.f32 %v1595_v55, %v1497_v2 }
 0x181   : > { %v1366_v29 = vadd.f32 %v1311_v39, %v993_v6 }
 0x184   : > { %v1597_v18 = vpop.f32.mrf.mxu0 }
 0x185   : > { %v1443_v34 = vpop.f32.mrf.mxu3  ;;  %2567 = vmatmul.msk.bf16.gmra.mxu2 %vm668_vm4, %v3248_v41  ;;  %v997_v45 = vpop.f32.mrf.mxu1 }
 0x186   : > { %v1498_v5 = vadd.f32 %v1443_v34, %v1366_v29  ;;  %v998_v41 = vadd.f32 %v997_v45, %v3342_v3 }
 0x188   : > { %v1314_v61 = vpop.f32.mrf.mxu2  ;;  %v3662_v26 = vadd.f32 %v1597_v18, %v1498_v5 }
 0x189   : > { %v1367_v57 = vadd.f32 %v1314_v61, %v996_v24 }
 0x18a   : > { %2583 = vmatmul.msk.bf16.gmra.mxu3 %vm668_vm4, %v3209_v20 }
 0x18c   : > { %v1600_v52 = vpop.f32.mrf.mxu0 }
 0x18d   : > { %v1446_v51 = vpop.f32.mrf.mxu3  ;;  %v1000_v38 = vpop.f32.mrf.mxu1 }
 0x18e   : > { %v1499_v60 = vadd.f32 %v1446_v51, %v1367_v57  ;;  %v1001_v0 = vadd.f32 %v1000_v38, %v3361_v23 }
 0x18f   : > { %2600 = vmatmul.msk.bf16.gmra.mxu0 %vm668_vm4, %v3262_v40 }
 0x190   : > { %v1316_v9 = vpop.f32.mrf.mxu2  ;;  %2548 = vmatmul.msk.bf16.gmra.mxu1 %vm668_vm4, %v3262_v40  ;;  %v3671_v59 = vadd.f32 %v1600_v52, %v1499_v60 }
 0x191   : > { %v1368_v43 = vadd.f32 %v1316_v9, %v998_v41 }
 0x194   : > { %v1602_v17 = vpop.f32.mrf.mxu0 }
 0x195   : > { %v1448_v63 = vpop.f32.mrf.mxu3  ;;  %2568 = vmatmul.msk.bf16.gmra.mxu2 %vm668_vm4, %v3270_v8  ;;  %v1002_v20 = vpop.f32.mrf.mxu1 }
 0x196   : > { %v1500_v15 = vadd.f32 %v1448_v63, %v1368_v43  ;;  %v1003_v8 = vadd.f32 %v1002_v20, %v3382_v1  ;;  %v4091_v43 = vld [vmem:[#allocation21_spill] sm:$0xff]  ;;  %v4092_v63 = vld [vmem:[#allocation19_spill] sm:$0xff] }
 0x198   : > { %v1319_v55 = vpop.f32.mrf.mxu2  ;;  %v3676_v47 = vadd.f32 %v1602_v17, %v1500_v15 }
 0x199   : > { %v1369_v3 = vadd.f32 %v1319_v55, %v1001_v0  ;;  %v4093_v55 = vld [vmem:[#allocation11_spill] sm:$0xff] }
 0x19a   : > { %2584 = vmatmul.msk.bf16.gmra.mxu3 %vm668_vm4, %v2891_v62 }
 0x19c   : > { %v1605_v40 = vpop.f32.mrf.mxu0 }
 0x19d   : > { %v1451_v48 = vpop.f32.mrf.mxu3  ;;  %v1005_v2 = vpop.f32.mrf.mxu1 }
 0x19e   : > { %v1501_v6 = vadd.f32 %v1451_v48, %v1369_v3  ;;  %v1006_v5 = vadd.f32 %v1005_v2, %v3404_v56  ;;  %v4094_v2 = vld [vmem:[#allocation24_spill] sm:$0xff] }
 0x19f   : > { %2601 = vmatmul.msk.bf16.gmra.mxu0 %vm668_vm4, %v3290_v12 }
 0x1a0   : > { %v1321_v39 = vpop.f32.mrf.mxu2  ;;  %2549 = vmatmul.msk.bf16.gmra.mxu1 %vm668_vm4, %v3290_v12  ;;  %v3685_v23 = vadd.f32 %v1605_v40, %v1501_v6  ;;  %v4095_v6 = vld [vmem:[#allocation20_spill] sm:$0xff] }
 0x1a1   : > { %v1370_v29 = vadd.f32 %v1321_v39, %v1003_v8 }
 0x1a4   : > { %v1607_v18 = vpop.f32.mrf.mxu0 }
 0x1a5   : > { %v1453_v34 = vpop.f32.mrf.mxu3  ;;  %2569 = vmatmul.msk.bf16.gmra.mxu2 %vm668_vm4, %v3298_v27  ;;  %v1007_v62 = vpop.f32.mrf.mxu1 }
 0x1a6   : > { %v1502_v45 = vadd.f32 %v1453_v34, %v1370_v29  ;;  %v1008_v27 = vadd.f32 %v1007_v62, %v3419_v44 }
 0x1a8   : > { %v1324_v24 = vpop.f32.mrf.mxu2  ;;  %v3690_v61 = vadd.f32 %v1607_v18, %v1502_v45  ;;  %v4096_v45 = vld [vmem:[#allocation25_spill] sm:$0xff] }
 0x1a9   : > { %v1371_v1 = vadd.f32 %v1324_v24, %v1006_v5 }
 0x1aa   : > { %2585 = vmatmul.msk.bf16.gmra.mxu3 %vm668_vm4, %v2965_v37 }
 0x1ac   : > { %v1610_v12 = vpop.f32.mrf.mxu0 }
 0x1ad   : > { %v1456_v57 = vpop.f32.mrf.mxu3  ;;  %v1010_v52 = vpop.f32.mrf.mxu1 }
 0x1ae   : > { %v1503_v51 = vadd.f32 %v1456_v57, %v1371_v1  ;;  %v1011_v20 = vadd.f32 %v1010_v52, %v4092_v63  ;;  %v4097_v1 = vld [vmem:[#allocation22_spill] sm:$0xff] }
 0x1af   : > { %2602 = vmatmul.msk.bf16.gmra.mxu0 %vm668_vm4, %v3322_v33 }
 0x1b0   : > { %v1326_v38 = vpop.f32.mrf.mxu2  ;;  %2550 = vmatmul.msk.bf16.gmra.mxu1 %vm668_vm4, %v3322_v33  ;;  %v3699_v56 = vadd.f32 %v1610_v12, %v1503_v51 }
 0x1b1   : > { %v1372_v60 = vadd.f32 %v1326_v38, %v1008_v27  ;;  %v4098_v27 = vld [vmem:[#allocation17_spill] sm:$0xff] }
 0x1b4   : > { %v1612_v41 = vpop.f32.mrf.mxu0 }
 0x1b5   : > { %v1458_v9 = vpop.f32.mrf.mxu3  ;;  %2570 = vmatmul.msk.bf16.gmra.mxu2 %vm668_vm4, %v4091_v43  ;;  %v1012_v37 = vpop.f32.mrf.mxu1  ;;  %v4099_v43 = vld [vmem:[#allocation27_spill] sm:$0xff] }
 0x1b6   : > { %v1504_v17 = vadd.f32 %v1458_v9, %v1372_v60  ;;  %v1013_v8 = vadd.f32 %v1012_v37, %v4095_v6  ;;  %v4100_v37 = vld [vmem:[#allocation23_spill] sm:$0xff] }
 0x1b8   : > { %v1329_v15 = vpop.f32.mrf.mxu2  ;;  %v3704_v0 = vadd.f32 %v1612_v41, %v1504_v17 }
 0x1b9   : > { %v1373_v44 = vadd.f32 %v1329_v15, %v1011_v20 }
 0x1ba   : > { %2586 = vmatmul.msk.bf16.gmra.mxu3 %vm668_vm4, %v4093_v55 }
 0x1bc   : > { %v1615_v33 = vpop.f32.mrf.mxu0 }
 0x1bd   : > { %v1461_v3 = vpop.f32.mrf.mxu3  ;;  %v1015_v40 = vpop.f32.mrf.mxu1 }
 0x1be   : > { %v1505_v48 = vadd.f32 %v1461_v3, %v1373_v44  ;;  %v1016_v12 = vadd.f32 %v1015_v40, %v4097_v1  ;;  %v4105_v1 = vld [vmem:[#allocation28_spill] sm:$0xff] }
 0x1bf   : > { %2603 = vmatmul.msk.bf16.gmra.mxu0 %vm668_vm4, %v4094_v2 }
 0x1c0   : > { %v1331_v39 = vpop.f32.mrf.mxu2  ;;  %2551 = vmatmul.msk.bf16.gmra.mxu1 %vm668_vm4, %v4094_v2  ;;  %v3713_v29 = vadd.f32 %v1615_v33, %v1505_v48  ;;  %v4101_v33 = vld [vmem:[#allocation29_spill] sm:$0xff]  ;;  %v4102_v48 = vld [vmem:[#allocation26_spill] sm:$0xff] }
 0x1c1   : > { %v1374_v18 = vadd.f32 %v1331_v39, %v1013_v8 }
 0x1c4   : > { %v1617_v34 = vpop.f32.mrf.mxu0 }
 0x1c5   : > { %v1463_v62 = vpop.f32.mrf.mxu3  ;;  %2571 = vmatmul.msk.bf16.gmra.mxu2 %vm668_vm4, %v4096_v45  ;;  %v1017_v5 = vpop.f32.mrf.mxu1 }
 0x1c6   : > { %v1506_v24 = vadd.f32 %v1463_v62, %v1374_v18  ;;  %v1018_v17 = vadd.f32 %v1017_v5, %v4100_v37  ;;  %v4103_v18 = vld [vmem:[#allocation5_spill] sm:$0xff] }
 0x1c8   : > { %v1334_v57 = vpop.f32.mrf.mxu2  ;;  %v3718_v52 = vadd.f32 %v1617_v34, %v1506_v24  ;;  %v4104_v24 = vld [vmem:[#allocation31_spill] sm:$0xff] }
 0x1c9   : > { %v1375_v51 = vadd.f32 %v1334_v57, %v1016_v12 }
 0x1ca   : > { %2587 = vmatmul.msk.bf16.gmra.mxu3 %vm668_vm4, %v4098_v27 }
 0x1cc   : > { %v1620_v38 = vpop.f32.mrf.mxu0 }
 0x1cd   : > { %v1466_v60 = vpop.f32.mrf.mxu3  ;;  %v1020_v41 = vpop.f32.mrf.mxu1 }
 0x1ce   : > { %v1507_v9 = vadd.f32 %v1466_v60, %v1375_v51  ;;  %v1021_v2 = vadd.f32 %v1020_v41, %v4102_v48 }
 0x1cf   : > { %2604 = vmatmul.msk.bf16.gmra.mxu0 %vm668_vm4, %v4099_v43 }
 0x1d0   : > { %v1336_v63 = vpop.f32.mrf.mxu2  ;;  %2552 = vmatmul.msk.bf16.gmra.mxu1 %vm668_vm4, %v4099_v43  ;;  %v3727_v20 = vadd.f32 %v1620_v38, %v1507_v9  ;;  %v4106_v43 = vld [vmem:[#allocation30_spill] sm:$0xff] }
 0x1d1   : > { %v1376_v15 = vadd.f32 %v1336_v63, %v1018_v17 }
 0x1d4   : > { %v1622_v44 = vpop.f32.mrf.mxu0 }
 0x1d5   : > { %v1468_v55 = vpop.f32.mrf.mxu3  ;;  %2572 = vmatmul.msk.bf16.gmra.mxu2 %vm668_vm4, %v4101_v33  ;;  %v1022_v3 = vpop.f32.mrf.mxu1 }
 0x1d6   : > { %v1508_v40 = vadd.f32 %v1468_v55, %v1376_v15  ;;  %v1023_v12 = vadd.f32 %v1022_v3, %v4105_v1 }
 0x1d8   : > { %v1339_v6 = vpop.f32.mrf.mxu2  ;;  %v3732_v8 = vadd.f32 %v1622_v44, %v1508_v40  ;;  %v4107_v40 = vld [vmem:[#allocation32_spill] sm:$0xff] }
 0x1d9   : > { %v1377_v39 = vadd.f32 %v1339_v6, %v1021_v2 }
 0x1da   : > { %2588 = vmatmul.msk.bf16.gmra.mxu3 %vm668_vm4, %v4103_v18 }
 0x1dc   : > { %v1625_v34 = vpop.f32.mrf.mxu0 }
 0x1dd   : > { %v1471_v62 = vpop.f32.mrf.mxu3  ;;  %v1025_v45 = vpop.f32.mrf.mxu1 }
 0x1de   : > { %v1509_v5 = vadd.f32 %v1471_v62, %v1377_v39  ;;  %v1026_v37 = vadd.f32 %v1025_v45, %v4106_v43 }
 0x1df   : > { %2605 = vmatmul.msk.bf16.gmra.mxu0 %vm668_vm4, %v4104_v24 }
 0x1e0   : > { %v1341_v57 = vpop.f32.mrf.mxu2  ;;  %2553 = vmatmul.msk.bf16.gmra.mxu1 %vm668_vm4, %v4104_v24  ;;  %v3741_v51 = vadd.f32 %v1625_v34, %v1509_v5 }
 0x1e1   : > { %v1378_v27 = vadd.f32 %v1341_v57, %v1023_v12 }
 0x1e4   : > { %v1627_v38 = vpop.f32.mrf.mxu0 }
 0x1e5   : > { %v1473_v60 = vpop.f32.mrf.mxu3  ;;  %2573 = vmatmul.msk.bf16.gmra.mxu2 %vm668_vm4, %v3434_v19  ;;  %v1027_v41 = vpop.f32.mrf.mxu1 }
 0x1e6   : > { %v1510_v9 = vadd.f32 %v1473_v60, %v1378_v27  ;;  %v1028_v19 = vadd.f32 %v1027_v41, %v4107_v40 }
 0x1e8   : > { %v1344_v17 = vpop.f32.mrf.mxu2  ;;  %v3746_v63 = vadd.f32 %v1627_v38, %v1510_v9 }
 0x1e9   : > { %v1379_v15 = vadd.f32 %v1344_v17, %v1026_v37 }
 0x1ea   : > { %2589 = vmatmul.msk.bf16.gmra.mxu3 %vm668_vm4, %v2990_v4 }
 0x1ec   : > { %v1630_v44 = vpop.f32.mrf.mxu0 }
 0x1ed   : > { %v1476_v55 = vpop.f32.mrf.mxu3  ;;  %v1693_v33 = vpop.f32.mrf.mxu1 }
 0x1ee   : > { %v1511_v3 = vadd.f32 %v1476_v55, %v1379_v15  ;;  %v1773_v62 = vadd.f32 %v1693_v33, %v3449_v32 }
 0x1ef   : > { %2606 = vmatmul.msk.bf16.gmra.mxu0 %vm668_vm4, %v3451_v10 }
 0x1f0   : > { %v1346_v48 = vpop.f32.mrf.mxu2  ;;  %2554 = vmatmul.msk.bf16.gmra.mxu1 %vm668_vm4, %v3451_v10  ;;  %v3755_v2 = vadd.f32 %v1630_v44, %v1511_v3  ;;  %v4108_v44 = vld [vmem:[#allocation18_spill] sm:$0xff] }
 0x1f1   : > { %v1380_v6 = vadd.f32 %v1346_v48, %v1028_v19  ;;  %v4109_v48 = vld [vmem:[#allocation34_spill] sm:$0xff] }
 0x1f4   : > { %v1632_v39 = vpop.f32.mrf.mxu0 }
 0x1f5   : > { %v1478_v4 = vpop.f32.mrf.mxu3  ;;  %2574 = vmatmul.msk.bf16.gmra.mxu2 %vm668_vm4, %v3458_v42  ;;  %v1695_v18 = vpop.f32.mrf.mxu1  ;;  %v3770_v42 = vld [vmem:[%s3987_s2] ss:$0 sm:$0xff] }
 0x1f6   : > { %v1512_v34 = vadd.f32 %v1478_v4, %v1380_v6  ;;  %v1774_v27 = vadd.f32 %v1695_v18, %v3462_v35  ;;  %v4110_v6 = vld [vmem:[#allocation12_spill] sm:$0xff] }
 0x1f8   : > { %v1825_v45 = vpop.f32.mrf.mxu2  ;;  %v3760_v5 = vadd.f32 %v1632_v39, %v1512_v34 }
 0x1f9   : > { %v1905_v10 = vadd.f32 %v1825_v45, %v1773_v62  ;;  %v4111_v45 = vld [vmem:[#allocation35_spill] sm:$0xff] }
 0x1fa   : > { %2590 = vmatmul.msk.bf16.gmra.mxu3 %vm668_vm4, %v3075_v25 }
 0x1fc   : > { %v2117_v24 = vpop.f32.mrf.mxu0 }
 0x1fd   : > { %v1979_v1 = vpop.f32.mrf.mxu3  ;;  %v1698_v12 = vpop.f32.mrf.mxu1 }
 0x1fe   : > { %v2059_v57 = vadd.f32 %v1979_v1, %v1905_v10  ;;  %v1775_v17 = vadd.f32 %v1698_v12, %v3475_v21  ;;  %v4112_v12 = vld [vmem:[#allocation33_spill] sm:$0xff] }
 0x1ff   : > { %2607 = vmatmul.msk.bf16.gmra.mxu0 %vm668_vm4, %v3477_v13 }
 0x200   : > { %v2197_v32 = vadd.f32 %v2117_v24, %v2059_v57  ;;  %v1827_v25 = vpop.f32.mrf.mxu2  ;;  %2555 = vmatmul.msk.bf16.gmra.mxu1 %vm668_vm4, %v3477_v13 }
 0x201   : > { %v1906_v60 = vadd.f32 %v1827_v25, %v1774_v27  ;;  %v4113_v25 = vld [vmem:[#allocation6_spill] sm:$0xff] }
 0x202   : > { %v2233_v38 = vadd.f32 %v3770_v42, %v2197_v32 }
 0x204   : > { %2265 = vst [vmem:[%s3778_s6] sm:$0xff] %v2233_v38  ;;  %v2119_v41 = vpop.f32.mrf.mxu0 }
 0x205   : > { %v1981_v9 = vpop.f32.mrf.mxu3  ;;  %2575 = vmatmul.msk.bf16.gmra.mxu2 %vm668_vm4, %v3484_v50  ;;  %v1700_v43 = vpop.f32.mrf.mxu1 }
 0x206   : > { %v2060_v37 = vadd.f32 %v1981_v9, %v1906_v60  ;;  %v1776_v39 = vadd.f32 %v1700_v43, %v4110_v6  ;;  %v4117_v6 = vld [vmem:[#allocation37_spill] sm:$0xff] }
 0x208   : > { %v2198_v35 = vadd.f32 %v2119_v41, %v2060_v37  ;;  %v1830_v15 = vpop.f32.mrf.mxu2  ;;  %v4114_v37 = vld [vmem:[#allocation38_spill] sm:$0xff] }
 0x209   : > { %v1907_v55 = vadd.f32 %v1830_v15, %v1775_v17  ;;  %v4115_v17 = vld [vmem:[#allocation36_spill] sm:$0xff] }
 0x20a   : > { %v2234_v13 = vadd.f32 %v3770_v42, %v2198_v35  ;;  %2591 = vmatmul.msk.bf16.gmra.mxu3 %vm668_vm4, %v4108_v44 }
 0x20c   : > { %2266 = vst [vmem:[%s3778_s6 + $0x8] sm:$0xff] %v2234_v13  ;;  %v2122_v33 = vpop.f32.mrf.mxu0 }
 0x20d   : > { %v1984_v3 = vpop.f32.mrf.mxu3  ;;  %v1703_v40 = vpop.f32.mrf.mxu1 }
 0x20e   : > { %v2061_v19 = vadd.f32 %v1984_v3, %v1907_v55  ;;  %v1777_v57 = vadd.f32 %v1703_v40, %v4112_v12  ;;  %v4116_v40 = vld [vmem:[#allocation39_spill] sm:$0xff] }
 0x20f   : > { %2608 = vmatmul.msk.bf16.gmra.mxu0 %vm668_vm4, %v4109_v48 }
 0x210   : > { %v2199_v50 = vadd.f32 %v2122_v33, %v2061_v19  ;;  %v1832_v21 = vpop.f32.mrf.mxu2  ;;  %2556 = vmatmul.msk.bf16.gmra.mxu1 %vm668_vm4, %v4109_v48 }
 0x211   : > { %v1908_v18 = vadd.f32 %v1832_v21, %v1776_v39 }
 0x212   : > { %v2235_v4 = vadd.f32 %v3770_v42, %v2199_v50 }
 0x214   : > { %2267 = vst [vmem:[%s3778_s6 + $0x10] sm:$0xff] %v2235_v4  ;;  %v2124_v34 = vpop.f32.mrf.mxu0 }
 0x215   : > { %v1986_v62 = vpop.f32.mrf.mxu3  ;;  %2576 = vmatmul.msk.bf16.gmra.mxu2 %vm668_vm4, %v4111_v45  ;;  %v1705_v10 = vpop.f32.mrf.mxu1 }
 0x216   : > { %v2062_v24 = vadd.f32 %v1986_v62, %v1908_v18  ;;  %v1778_v15 = vadd.f32 %v1705_v10, %v4115_v17  ;;  %v4118_v18 = vld [vmem:[#allocation7_spill] sm:$0xff]  ;;  %v4122_v17 = vld [vmem:[#allocation41_spill] sm:$0xff] }
 0x218   : > { %v2200_v1 = vadd.f32 %v2124_v34, %v2062_v24  ;;  %v1835_v32 = vpop.f32.mrf.mxu2 }
 0x219   : > { %v1909_v38 = vadd.f32 %v1835_v32, %v1777_v57  ;;  %v4120_v57 = vld [vmem:[#allocation40_spill] sm:$0xff] }
 0x21a   : > { %v2236_v27 = vadd.f32 %v3770_v42, %v2200_v1  ;;  %2592 = vmatmul.msk.bf16.gmra.mxu3 %vm668_vm4, %v4113_v25  ;;  %v4119_v1 = vld [vmem:[#allocation42_spill] sm:$0xff] }
 0x21c   : > { %2268 = vst [vmem:[%s3778_s6 + $0x18] sm:$0xff] %v2236_v27  ;;  %v2127_v60 = vpop.f32.mrf.mxu0 }
 0x21d   : > { %v1989_v41 = vpop.f32.mrf.mxu3  ;;  %v1708_v9 = vpop.f32.mrf.mxu1 }
 0x21e   : > { %v2063_v43 = vadd.f32 %v1989_v41, %v1909_v38  ;;  %v1779_v39 = vadd.f32 %v1708_v9, %v4117_v6  ;;  %v4121_v9 = vld [vmem:[#allocation9_spill] sm:$0xff] }
 0x21f   : > { %2609 = vmatmul.msk.bf16.gmra.mxu0 %vm668_vm4, %v4114_v37 }
 0x220   : > { %v2201_v35 = vadd.f32 %v2127_v60, %v2063_v43  ;;  %v1837_v13 = vpop.f32.mrf.mxu2  ;;  %2557 = vmatmul.msk.bf16.gmra.mxu1 %vm668_vm4, %v4114_v37 }
 0x221   : > { %v1910_v55 = vadd.f32 %v1837_v13, %v1778_v15 }
 0x222   : > { %v2237_v44 = vadd.f32 %v3770_v42, %v2201_v35 }
 0x224   : > { %2269 = vst [vmem:[%s3778_s6 + $0x20] sm:$0xff] %v2237_v44  ;;  %v2129_v33 = vpop.f32.mrf.mxu0 }
 0x225   : > { %v1991_v3 = vpop.f32.mrf.mxu3  ;;  %2577 = vmatmul.msk.bf16.gmra.mxu2 %vm668_vm4, %v4116_v40  ;;  %v1710_v19 = vpop.f32.mrf.mxu1 }
 0x226   : > { %v2064_v48 = vadd.f32 %v1991_v3, %v1910_v55  ;;  %v1780_v32 = vadd.f32 %v1710_v19, %v4120_v57  ;;  %v4123_v55 = vld [vmem:[#allocation13_spill] sm:$0xff] }
 0x228   : > { %v2202_v50 = vadd.f32 %v2129_v33, %v2064_v48  ;;  %v1840_v21 = vpop.f32.mrf.mxu2 }
 0x229   : > { %v1911_v34 = vadd.f32 %v1840_v21, %v1779_v39  ;;  %v4125_v39 = vld [vmem:[#allocation10_spill] sm:$0xff] }
 0x22a   : > { %v2238_v4 = vadd.f32 %v3770_v42, %v2202_v50  ;;  %2593 = vmatmul.msk.bf16.gmra.mxu3 %vm668_vm4, %v4118_v18  ;;  %v4124_v50 = vld [vmem:[#allocation44_spill] sm:$0xff] }
 0x22c   : > { %2270 = vst [vmem:[%s3778_s6 + $0x28] sm:$0xff] %v2238_v4  ;;  %v2132_v62 = vpop.f32.mrf.mxu0 }
 0x22d   : > { %v1994_v45 = vpop.f32.mrf.mxu3  ;;  %v1713_v10 = vpop.f32.mrf.mxu1 }
 0x22e   : > { %v2065_v24 = vadd.f32 %v1994_v45, %v1911_v34  ;;  %v1781_v15 = vadd.f32 %v1713_v10, %v4122_v17  ;;  %v4128_v17 = vld [vmem:[#allocation8_spill] sm:$0xff] }
 0x22f   : > { %2610 = vmatmul.msk.bf16.gmra.mxu0 %vm668_vm4, %v4119_v1 }
 0x230   : > { %v2203_v12 = vadd.f32 %v2132_v62, %v2065_v24  ;;  %v1842_v27 = vpop.f32.mrf.mxu2  ;;  %2558 = vmatmul.msk.bf16.gmra.mxu1 %vm668_vm4, %v4119_v1 }
 0x231   : > { %v1912_v38 = vadd.f32 %v1842_v27, %v1780_v32 }
 0x232   : > { %v2239_v25 = vadd.f32 %v3770_v42, %v2203_v12  ;;  %v4126_v12 = vld [vmem:[#allocation43_spill] sm:$0xff] }
 0x234   : > { %2271 = vst [vmem:[%s3778_s6 + $0x30] sm:$0xff] %v2239_v25  ;;  %v2134_v60 = vpop.f32.mrf.mxu0 }
 0x235   : > { %v1996_v41 = vpop.f32.mrf.mxu3  ;;  %2578 = vmatmul.msk.bf16.gmra.mxu2 %vm668_vm4, %v4121_v9  ;;  %v1715_v43 = vpop.f32.mrf.mxu1  ;;  %v3846_v9 = vld [vmem:[%s2852_s11 + $0xcc] sm:$0xf] }
 0x236   : > { %v2066_v37 = vadd.f32 %v1996_v41, %v1912_v38  ;;  %v1782_v21 = vadd.f32 %v1715_v43, %v4125_v39  ;;  %v3849_v43 = vld [vmem:[%s2852_s11 + $0xd0] sm:$0xf] }
 0x238   : > { %v2204_v35 = vadd.f32 %v2134_v60, %v2066_v37  ;;  %v1845_v13 = vpop.f32.mrf.mxu2  ;;  %v4127_v60 = vld [vmem:[#allocation45_spill] sm:$0xff] }
 0x239   : > { %v1913_v33 = vadd.f32 %v1845_v13, %v1781_v15  ;;  %v1670_v41 = vrot.slane %v4127_v60, 5  ;;  %v2545_v15 = vrot.slane %v4128_v17, 9  ;;  %v1938_v13 = vshrl.u32 %v3846_v9, 16 }
 0x23a   : > { %v2240_v44 = vadd.f32 %v3770_v42, %v2204_v35  ;;  %2594 = vmatmul.msk.bf16.gmra.mxu3 %vm668_vm4, %v4123_v55  ;;  %v1951_v55 = vshrl.u32 %v3849_v43, 16 }
 0x23b   : > { %v1671_v39 = vsel %vm3182_vm7, %v2545_v15, %v1670_v41 }
 0x23c   : > { %2272 = vst [vmem:[%s3778_s6 + $0x38] sm:$0xff] %v2240_v44  ;;  %v2137_v3 = vpop.f32.mrf.mxu0  ;;  %v1947_v44 = vshll.u32 %v3849_v43, 16 }
 0x23d   : > { %v1999_v40 = vpop.f32.mrf.mxu3  ;;  %v1718_v19 = vpop.f32.mrf.mxu1 }
 0x23e   : > { %v2067_v48 = vadd.f32 %v1999_v40, %v1913_v33  ;;  %v1783_v57 = vadd.f32 %v1718_v19, %v4126_v12  ;;  %v1672_v19 = vrot.slane %v1670_v41, 4 }
 0x23f   : > { %2611 = vmatmul.msk.bf16.gmra.mxu0 %vm668_vm4, %v4124_v50 }
 0x240   : > { %v2205_v6 = vadd.f32 %v2137_v3, %v2067_v48  ;;  %v1847_v4 = vpop.f32.mrf.mxu2  ;;  %2559 = vmatmul.msk.bf16.gmra.mxu1 %vm668_vm4, %v4124_v50  ;;  %v1673_v48 = vrot.slane %v3604_v11, 5 }
 0x241   : > { %v1914_v34 = vadd.f32 %v1847_v4, %v1782_v21  ;;  %v1940_v21 = vrot.slane %v1938_v13, 4  ;;  %v2094_v13 = vrot.slane %v3849_v43, 5 }
 0x242   : > { %v2241_v18 = vadd.f32 %v3770_v42, %v2205_v6 }
 0x243   : > { %v2096_v43 = vrot.slane %v2094_v13, 4 }
 0x244   : > { %2273 = vst [vmem:[%s3778_s6 + $0x40] sm:$0xff] %v2241_v18  ;;  %v2139_v62 = vpop.f32.mrf.mxu0  ;;  %v1949_v18 = vrot.slane %v1947_v44, 5 }
 0x245   : > { %v2001_v45 = vpop.f32.mrf.mxu3  ;;  %2579 = vmatmul.msk.bf16.gmra.mxu2 %vm668_vm4, %v3597_v30  ;;  %v1720_v10 = vpop.f32.mrf.mxu1 }
 0x246   : > { %v2068_v24 = vadd.f32 %v2001_v45, %v1914_v34  ;;  %v1784_v3 = vadd.f32 %v1720_v10, %v3601_v49  ;;  %v1953_v34 = vrot.slane %v1951_v55, 4  ;;  %v1674_v49 = vsel %vm3182_vm7, %v1672_v19, %v1673_v48  ;;  %v223_v45 = vld [vmem:[%s2852_s11 + $0xd4] sm:$0x1]  ;;  %v2637_v48 = vld [vmem:[%s2852_s11 + $0xcc] sm:$0xff]  ;;  %s2310_s11 = sshll.u32 %s3778_s6, 4  ;;  %s2311_s11 = int_to_ptr.vmem [resolvable:$true] %s2310_s11 }
 0x247   : > { %v2097_v19 = vrot.slane %v223_v45, 5 }
 0x248   : > { %v2206_v1 = vadd.f32 %v2139_v62, %v2068_v24  ;;  %v1850_v32 = vpop.f32.mrf.mxu2  ;;  %v1675_v24 = vunpack.c.l.b16 %v1671_v39 }
 0x249   : > { %v1915_v25 = vadd.f32 %v1850_v32, %v1783_v57  ;;  %v1954_v57 = vor.u32 %v1953_v34, %v1949_v18  ;;  %v1957_v32 = vshll.u32 %v223_v45, 16 }
 0x24a   : > { %v2242_v27 = vadd.f32 %v3770_v42, %v2206_v1  ;;  %2595 = vmatmul.msk.bf16.gmra.mxu3 %vm668_vm4, %v3191_v53  ;;  %v1941_v53 = vshll.u32 %v3846_v9, 16  ;;  %v1676_v1 = vunpack.c.l.b16 %v1674_v49 }
 0x24b   : > { %v1959_v17 = vrot.slane %v1957_v32, 5 }
 0x24c   : > { %2274 = vst [vmem:[%s3778_s6 + $0x48] sm:$0xff] %v2242_v27  ;;  %v2142_v38 = vpop.f32.mrf.mxu0  ;;  %v1943_v4 = vrot.slane %v1941_v53, 5 }
 0x24d   : > { %v2004_v30 = vpop.f32.mrf.mxu3  ;;  %v1723_v37 = vpop.f32.mrf.mxu1 }
 0x24e   : > { %v2069_v35 = vadd.f32 %v2004_v30, %v1915_v25  ;;  %v1944_v12 = vor.u32 %v1943_v4, %v1940_v21  ;;  %v1785_v25 = vadd.f32 %v1723_v37, %v3618_v7  ;;  %v1677_v30 = vpack.c.b16 %v1676_v1, %v1675_v24 }
 0x24f   : > { %2612 = vmatmul.msk.bf16.gmra.mxu0 %vm668_vm4, %v3620_v46  ;;  %v2598_v37 = vrot.slane %v3846_v9, 9 }
 0x250   : > { %v2207_v33 = vadd.f32 %v2142_v38, %v2069_v35  ;;  %v1852_v40 = vpop.f32.mrf.mxu2  ;;  %2560 = vmatmul.msk.bf16.gmra.mxu1 %vm668_vm4, %v3620_v46  ;;  %v1955_v35 = vrot.slane %v1954_v57, 4 }
 0x251   : > { %v1916_v6 = vadd.f32 %v1852_v40, %v1784_v3  ;;  %v2095_v36 = vsel %vm3182_vm7, %v2598_v37, %v2094_v13 }
 0x252   : > { %v2243_v50 = vadd.f32 %v3770_v42, %v2207_v33  ;;  %v2099_v49 = vunpack.c.l.b16 %v2095_v36 }
 0x254   : > { %2275 = vst [vmem:[%s3778_s6 + $0x50] sm:$0xff] %v2243_v50  ;;  %v2144_v62 = vpop.f32.mrf.mxu0 }
 0x255   : > { %v2006_v46 = vpop.f32.mrf.mxu3  ;;  %2580 = vmatmul.msk.bf16.gmra.mxu2 %vm668_vm4, %v3629_v54  ;;  %v1725_v11 = vpop.f32.mrf.mxu1  ;;  %v1945_v54 = vrot.slane %v1944_v12, 4 }
 0x256   : > { %v2070_v10 = vadd.f32 %v2006_v46, %v1916_v6  ;;  %v1786_v3 = vadd.f32 %v1725_v11, %v3632_v28  ;;  %v2098_v28 = vsel %vm3182_vm7, %v2096_v43, %v2097_v19 }
 0x257   : > { %v1950_v7 = vsel %vm2879_vm3, %v1945_v54, %v1949_v18  ;;  %v2100_v45 = vunpack.c.l.b16 %v2098_v28 }
 0x258   : > { %v2208_v27 = vadd.f32 %v2144_v62, %v2070_v10  ;;  %v1855_v38 = vpop.f32.mrf.mxu2  ;;  %v1961_v39 = vunpack.c.l.b16 %v1950_v7 }
 0x259   : > { %v1917_v41 = vadd.f32 %v1855_v38, %v1785_v25  ;;  %v2101_v1 = vpack.c.b16 %v2100_v45, %v2099_v49 }
 0x25a   : > { %v2244_v60 = vadd.f32 %v3770_v42, %v2208_v27  ;;  %2596 = vmatmul.msk.bf16.gmra.mxu3 %vm668_vm4, %v3636_v22  ;;  %v1960_v22 = vsel %vm2879_vm3, %v1955_v35, %v1959_v17 }
 0x25b   : > { %v1962_v21 = vunpack.c.l.b16 %v1960_v22 }
 0x25c   : > { %2276 = vst [vmem:[%s3778_s6 + $0x58] sm:$0xff] %v2244_v60  ;;  %v2147_v15 = vpop.f32.mrf.mxu0 }
 0x25d   : > { %v2009_v53 = vpop.f32.mrf.mxu3  ;;  %v1728_v44 = vpop.f32.mrf.mxu1  ;;  %v1963_v62 = vpack.c.b16 %v1962_v21, %v1961_v39 }
 0x25e   : > { %v2071_v55 = vadd.f32 %v2009_v53, %v1917_v41  ;;  %v1787_v11 = vadd.f32 %v1728_v44, %v3643_v58 }
 0x25f   : > { %2613 = vmatmul.msk.bf16.gmra.mxu0 %vm668_vm4, %v1677_v30 }
 0x260   : > { %v2209_v33 = vadd.f32 %v2147_v15, %v2071_v55  ;;  %v1857_v40 = vpop.f32.mrf.mxu2  ;;  %2561 = vmatmul.msk.bf16.gmra.mxu1 %vm668_vm4, %v1677_v30 }
 0x261   : > { %v1918_v6 = vadd.f32 %v1857_v40, %v1786_v3 }
 0x262   : > { %v2245_v50 = vadd.f32 %v3770_v42, %v2209_v33 }
 0x264   : > { %2277 = vst [vmem:[%s3778_s6 + $0x60] sm:$0xff] %v2245_v50  ;;  %v2149_v4 = vpop.f32.mrf.mxu0 }
 0x265   : > { %v2011_v9 = vpop.f32.mrf.mxu3  ;;  %2581 = vmatmul.msk.bf16.gmra.mxu2 %vm668_vm4, %v2637_v48  ;;  %v1730_v18 = vpop.f32.mrf.mxu1 }
 0x266   : > { %v2072_v34 = vadd.f32 %v2011_v9, %v1918_v6  ;;  %v1788_v38 = vadd.f32 %v1730_v18, %v3648_v31 }
 0x268   : > { %v2210_v46 = vadd.f32 %v2149_v4, %v2072_v34  ;;  %v1860_v10 = vpop.f32.mrf.mxu2 }
 0x269   : > { %v1919_v14 = vadd.f32 %v1860_v10, %v1787_v11 }
 0x26a   : > { %v2246_v24 = vadd.f32 %v3770_v42, %v2210_v46  ;;  %2597 = vmatmul.msk.bf16.gmra.mxu3 %vm668_vm4, %v1963_v62 }
 0x26c   : > { %2278 = vst [vmem:[%s3778_s6 + $0x68] sm:$0xff] %v2246_v24  ;;  %v2152_v12 = vpop.f32.mrf.mxu0 }
 0x26d   : > { %v2014_v57 = vpop.f32.mrf.mxu3  ;;  %v1733_v32 = vpop.f32.mrf.mxu1 }
 0x26e   : > { %v2073_v27 = vadd.f32 %v2014_v57, %v1919_v14  ;;  %v1789_v13 = vadd.f32 %v1733_v32, %v3657_v16 }
 0x26f   : > { %2614 = vmatmul.msk.bf16.gmra.mxu0 %vm668_vm4, %v2101_v1 }
 0x270   : > { %v2211_v25 = vadd.f32 %v2152_v12, %v2073_v27  ;;  %v1862_v58 = vpop.f32.mrf.mxu2 }
 0x271   : > { %v1920_v41 = vadd.f32 %v1862_v58, %v1788_v38 }
 0x272   : > { %v2247_v60 = vadd.f32 %v3770_v42, %v2211_v25 }
 0x274   : > { %2279 = vst [vmem:[%s3778_s6 + $0x70] sm:$0xff] %v2247_v60  ;;  %v2154_v30 = vpop.f32.mrf.mxu0 }
 0x275   : > { %v2016_v54 = vpop.f32.mrf.mxu3  ;;  %v1735_v35 = vpop.f32.mrf.mxu1 }
 0x276   : > { %v2074_v17 = vadd.f32 %v2016_v54, %v1920_v41  ;;  %v1790_v3 = vadd.f32 %v1735_v35, %v3662_v26 }
 0x278   : > { %v2212_v15 = vadd.f32 %v2154_v30, %v2074_v17  ;;  %v1865_v53 = vpop.f32.mrf.mxu2 }
 0x279   : > { %v1921_v55 = vadd.f32 %v1865_v53, %v1789_v13 }
 0x27a   : > { %v2248_v44 = vadd.f32 %v3770_v42, %v2212_v15 }
 0x27c   : > { %2280 = vst [vmem:[%s3778_s6 + $0x78] sm:$0xff] %v2248_v44  ;;  %v2157_v7 = vpop.f32.mrf.mxu0 }
 0x27d   : > { %v2019_v31 = vpop.f32.mrf.mxu3  ;;  %v1738_v22 = vpop.f32.mrf.mxu1 }
 0x27e   : > { %v2075_v37 = vadd.f32 %v2019_v31, %v1921_v55  ;;  %v1791_v21 = vadd.f32 %v1738_v22, %v3671_v59 }
 0x280   : > { %v2213_v33 = vadd.f32 %v2157_v7, %v2075_v37  ;;  %v1867_v40 = vpop.f32.mrf.mxu2 }
 0x281   : > { %v1922_v19 = vadd.f32 %v1867_v40, %v1790_v3 }
 0x282   : > { %v2249_v43 = vadd.f32 %v3770_v42, %v2213_v33 }
 0x284   : > { %2281 = vst [vmem:[%s3778_s6 + $0x80] sm:$0xff] %v2249_v43  ;;  %v2159_v48 = vpop.f32.mrf.mxu0 }
 0x285   : > { %v2021_v16 = vpop.f32.mrf.mxu3  ;;  %v1740_v50 = vpop.f32.mrf.mxu1 }
 0x286   : > { %v2076_v6 = vadd.f32 %v2021_v16, %v1922_v19  ;;  %v1792_v49 = vadd.f32 %v1740_v50, %v3676_v47 }
 0x288   : > { %v2214_v39 = vadd.f32 %v2159_v48, %v2076_v6  ;;  %v1870_v4 = vpop.f32.mrf.mxu2 }
 0x289   : > { %v1923_v28 = vadd.f32 %v1870_v4, %v1791_v21 }
 0x28a   : > { %v2250_v36 = vadd.f32 %v3770_v42, %v2214_v39 }
 0x28c   : > { %2282 = vst [vmem:[%s3778_s6 + $0x88] sm:$0xff] %v2250_v36  ;;  %v2162_v9 = vpop.f32.mrf.mxu0 }
 0x28d   : > { %v2024_v26 = vpop.f32.mrf.mxu3  ;;  %v1743_v18 = vpop.f32.mrf.mxu1 }
 0x28e   : > { %v2077_v34 = vadd.f32 %v2024_v26, %v1923_v28  ;;  %v1793_v12 = vadd.f32 %v1743_v18, %v3685_v23 }
 0x290   : > { %v2215_v62 = vadd.f32 %v2162_v9, %v2077_v34  ;;  %v1872_v45 = vpop.f32.mrf.mxu2 }
 0x291   : > { %v1924_v11 = vadd.f32 %v1872_v45, %v1792_v49 }
 0x292   : > { %v2251_v46 = vadd.f32 %v3770_v42, %v2215_v62 }
 0x294   : > { %2283 = vst [vmem:[%s3778_s6 + $0x90] sm:$0xff] %v2251_v46  ;;  %v2164_v10 = vpop.f32.mrf.mxu0 }
 0x295   : > { %v2026_v59 = vpop.f32.mrf.mxu3  ;;  %v1745_v24 = vpop.f32.mrf.mxu1 }
 0x296   : > { %v2078_v14 = vadd.f32 %v2026_v59, %v1924_v11  ;;  %v1794_v41 = vadd.f32 %v1745_v24, %v3690_v61 }
 0x298   : > { %v2216_v1 = vadd.f32 %v2164_v10, %v2078_v14  ;;  %v1875_v57 = vpop.f32.mrf.mxu2 }
 0x299   : > { %v1925_v27 = vadd.f32 %v1875_v57, %v1793_v12 }
 0x29a   : > { %v2252_v32 = vadd.f32 %v3770_v42, %v2216_v1 }
 0x29c   : > { %2284 = vst [vmem:[%s3778_s6 + $0x98] sm:$0xff] %v2252_v32  ;;  %v2167_v25 = vpop.f32.mrf.mxu0 }
 0x29d   : > { %v2029_v47 = vpop.f32.mrf.mxu3  ;;  %v1748_v38 = vpop.f32.mrf.mxu1 }
 0x29e   : > { %v2079_v58 = vadd.f32 %v2029_v47, %v1925_v27  ;;  %v1795_v44 = vadd.f32 %v1748_v38, %v3699_v56 }
 0x2a0   : > { %v2217_v60 = vadd.f32 %v2167_v25, %v2079_v58  ;;  %v1877_v30 = vpop.f32.mrf.mxu2 }
 0x2a1   : > { %v1926_v35 = vadd.f32 %v1877_v30, %v1794_v41 }
 0x2a2   : > { %v2253_v54 = vadd.f32 %v3770_v42, %v2217_v60 }
 0x2a4   : > { %2285 = vst [vmem:[%s3778_s6 + $0xa0] sm:$0xff] %v2253_v54  ;;  %v2169_v17 = vpop.f32.mrf.mxu0 }
 0x2a5   : > { %v2031_v23 = vpop.f32.mrf.mxu3  ;;  %v1750_v15 = vpop.f32.mrf.mxu1 }
 0x2a6   : > { %v2080_v13 = vadd.f32 %v2031_v23, %v1926_v35  ;;  %v1796_v40 = vadd.f32 %v1750_v15, %v3704_v0 }
 0x2a8   : > { %v2218_v53 = vadd.f32 %v2169_v17, %v2080_v13  ;;  %v1880_v55 = vpop.f32.mrf.mxu2 }
 0x2a9   : > { %v1927_v31 = vadd.f32 %v1880_v55, %v1795_v44 }
 0x2aa   : > { %v2254_v7 = vadd.f32 %v3770_v42, %v2218_v53 }
 0x2ac   : > { %2286 = vst [vmem:[%s3778_s6 + $0xa8] sm:$0xff] %v2254_v7  ;;  %v2172_v22 = vpop.f32.mrf.mxu0 }
 0x2ad   : > { %v2034_v61 = vpop.f32.mrf.mxu3  ;;  %v1753_v37 = vpop.f32.mrf.mxu1 }
 0x2ae   : > { %v2081_v33 = vadd.f32 %v2034_v61, %v1927_v31  ;;  %v1797_v21 = vadd.f32 %v1753_v37, %v3713_v29 }
 0x2b0   : > { %v2219_v3 = vadd.f32 %v2172_v22, %v2081_v33  ;;  %v1882_v43 = vpop.f32.mrf.mxu2 }
 0x2b1   : > { %v1928_v48 = vadd.f32 %v1882_v43, %v1796_v40 }
 0x2b2   : > { %v2255_v19 = vadd.f32 %v3770_v42, %v2219_v3 }
 0x2b4   : > { %2287 = vst [vmem:[%s3778_s6 + $0xb0] sm:$0xff] %v2255_v19  ;;  %v2174_v16 = vpop.f32.mrf.mxu0 }
 0x2b5   : > { %v2036_v56 = vpop.f32.mrf.mxu3  ;;  %v1755_v50 = vpop.f32.mrf.mxu1 }
 0x2b6   : > { %v2082_v6 = vadd.f32 %v2036_v56, %v1928_v48  ;;  %v1798_v62 = vadd.f32 %v1755_v50, %v3718_v52 }
 0x2b8   : > { %v2220_v39 = vadd.f32 %v2174_v16, %v2082_v6  ;;  %v1885_v4 = vpop.f32.mrf.mxu2 }
 0x2b9   : > { %v1929_v28 = vadd.f32 %v1885_v4, %v1797_v21 }
 0x2ba   : > { %v2256_v36 = vadd.f32 %v3770_v42, %v2220_v39 }
 0x2bc   : > { %2288 = vst [vmem:[%s3778_s6 + $0xb8] sm:$0xff] %v2256_v36  ;;  %v2177_v9 = vpop.f32.mrf.mxu0 }
 0x2bd   : > { %v2039_v0 = vpop.f32.mrf.mxu3  ;;  %v1758_v26 = vpop.f32.mrf.mxu1 }
 0x2be   : > { %v2083_v18 = vadd.f32 %v2039_v0, %v1929_v28  ;;  %v1799_v14 = vadd.f32 %v1758_v26, %v3727_v20 }
 0x2c0   : > { %v2221_v34 = vadd.f32 %v2177_v9, %v2083_v18  ;;  %v1887_v49 = vpop.f32.mrf.mxu2 }
 0x2c1   : > { %v1930_v46 = vadd.f32 %v1887_v49, %v1798_v62 }
 0x2c2   : > { %v2257_v45 = vadd.f32 %v3770_v42, %v2221_v34 }
 0x2c4   : > { %2289 = vst [vmem:[%s3778_s6 + $0xc0] sm:$0xff] %v2257_v45  ;;  %v2179_v11 = vpop.f32.mrf.mxu0 }
 0x2c5   : > { %v2041_v29 = vpop.f32.mrf.mxu3  ;;  %v1760_v10 = vpop.f32.mrf.mxu1 }
 0x2c6   : > { %v2084_v59 = vadd.f32 %v2041_v29, %v1930_v46  ;;  %v1800_v38 = vadd.f32 %v1760_v10, %v3732_v8 }
 0x2c8   : > { %v2222_v24 = vadd.f32 %v2179_v11, %v2084_v59  ;;  %v1890_v1 = vpop.f32.mrf.mxu2 }
 0x2c9   : > { %v1931_v57 = vadd.f32 %v1890_v1, %v1799_v14 }
 0x2ca   : > { %v2258_v12 = vadd.f32 %v3770_v42, %v2222_v24 }
 0x2cc   : > { %2290 = vst [vmem:[%s3778_s6 + $0xc8] sm:$0xff] %v2258_v12  ;;  %v2182_v32 = vpop.f32.mrf.mxu0 }
 0x2cd   : > { %v2044_v52 = vpop.f32.mrf.mxu3  ;;  %v1763_v25 = vpop.f32.mrf.mxu1 }
 0x2ce   : > { %v2085_v27 = vadd.f32 %v2044_v52, %v1931_v57  ;;  %v1801_v17 = vadd.f32 %v1763_v25, %v3741_v51 }
 0x2d0   : > { %v2223_v47 = vadd.f32 %v2182_v32, %v2085_v27  ;;  %v1892_v58 = vpop.f32.mrf.mxu2 }
 0x2d1   : > { %v1932_v41 = vadd.f32 %v1892_v58, %v1800_v38 }
 0x2d2   : > { %v2259_v60 = vadd.f32 %v3770_v42, %v2223_v47 }
 0x2d4   : > { %2291 = vst [vmem:[%s3778_s6 + $0xd0] sm:$0xff] %v2259_v60  ;;  %v2184_v30 = vpop.f32.mrf.mxu0 }
 0x2d5   : > { %v2046_v20 = vpop.f32.mrf.mxu3  ;;  %v1765_v15 = vpop.f32.mrf.mxu1 }
 0x2d6   : > { %v2086_v54 = vadd.f32 %v2046_v20, %v1932_v41  ;;  %v1802_v31 = vadd.f32 %v1765_v15, %v3746_v63 }
 0x2d8   : > { %v2224_v35 = vadd.f32 %v2184_v30, %v2086_v54  ;;  %v1895_v23 = vpop.f32.mrf.mxu2 }
 0x2d9   : > { %v1933_v53 = vadd.f32 %v1895_v23, %v1801_v17 }
 0x2da   : > { %v2260_v13 = vadd.f32 %v3770_v42, %v2224_v35 }
 0x2dc   : > { %2292 = vst [vmem:[%s3778_s6 + $0xd8] sm:$0xff] %v2260_v13  ;;  %v2187_v44 = vpop.f32.mrf.mxu0 }
 0x2dd   : > { %v2049_v8 = vpop.f32.mrf.mxu3  ;;  %v1768_v33 = vpop.f32.mrf.mxu1 }
 0x2de   : > { %v2087_v55 = vadd.f32 %v2049_v8, %v1933_v53  ;;  %v1803_v19 = vadd.f32 %v1768_v33, %v3755_v2 }
 0x2e0   : > { %v2225_v7 = vadd.f32 %v2187_v44, %v2087_v55  ;;  %v1897_v22 = vpop.f32.mrf.mxu2 }
 0x2e1   : > { %v1934_v37 = vadd.f32 %v1897_v22, %v1802_v31 }
 0x2e2   : > { %v2261_v61 = vadd.f32 %v3770_v42, %v2225_v7 }
 0x2e4   : > { %2293 = vst [vmem:[%s3778_s6 + $0xe0] sm:$0xff] %v2261_v61  ;;  %v2189_v51 = vpop.f32.mrf.mxu0 }
 0x2e5   : > { %v2051_v3 = vpop.f32.mrf.mxu3  ;;  %v1770_v63 = vpop.f32.mrf.mxu1 }
 0x2e6   : > { %v2088_v40 = vadd.f32 %v2051_v3, %v1934_v37  ;;  %v1804_v4 = vadd.f32 %v1770_v63, %v3760_v5 }
 0x2e8   : > { %v2226_v43 = vadd.f32 %v2189_v51, %v2088_v40  ;;  %v1900_v48 = vpop.f32.mrf.mxu2 }
 0x2e9   : > { %v1935_v56 = vadd.f32 %v1900_v48, %v1803_v19 }
 0x2ea   : > { %v2262_v16 = vadd.f32 %v3770_v42, %v2226_v43 }
 0x2ec   : > { %2294 = vst [vmem:[%s3778_s6 + $0xe8] sm:$0xff] %v2262_v16  ;;  %v2192_v50 = vpop.f32.mrf.mxu0 }
 0x2ed   : > { %v2054_v6 = vpop.f32.mrf.mxu3 }
 0x2ee   : > { %v2089_v39 = vadd.f32 %v2054_v6, %v1935_v56 }
 0x2f0   : > { %v2227_v21 = vadd.f32 %v2192_v50, %v2089_v39  ;;  %v1902_v36 = vpop.f32.mrf.mxu2 }
 0x2f1   : > { %v1936_v28 = vadd.f32 %v1902_v36, %v1804_v4 }
 0x2f2   : > { %v2263_v2 = vadd.f32 %v3770_v42, %v2227_v21 }
 0x2f4   : > { %2295 = vst [vmem:[%s3778_s6 + $0xf0] sm:$0xff] %v2263_v2  ;;  %v2194_v26 = vpop.f32.mrf.mxu0 }
 0x2f5   : > { %v2056_v9 = vpop.f32.mrf.mxu3 }
 0x2f6   : > { %v2090_v0 = vadd.f32 %v2056_v9, %v1936_v28 }
 0x2f8   : > { %v2228_v18 = vadd.f32 %v2194_v26, %v2090_v0 }
 0x2fa   : > { %v2264_v5 = vadd.f32 %v3770_v42, %v2228_v18 }
 0x2fc   : > { %2296 = vst [vmem:[%s3778_s6 + $0xf8] sm:$0xff] %v2264_v5 }
 0x2fd   : > { %2720 = shalt.err (!%p2717_p3)
}
 0x2fe   : > { %s2757_s29 = smov 128   ;;  %s2758_s30 = smov 8  }
 0x2ff   : > { %2643 = dma.vmem_to_hbm [thread:$0]  (%p2817_p5), %s2311_s11, 4096, %s2313_s17, %s2298_s16, %s2757_s29, %s2757_s29, %s2758_s30  }
 0x300 PF: > { %p2649_p4 = scmp.ge.s32.totalorder %s2755_s15, 2  ;;  %s2327_s4 = sand.u32 1, %s2743_s12  }
 0x301   : > { %s2328_s5 = scalar_lea.sflag [#allocation3], %s2327_s4 }
 0x302   : > { %p2646_p7 = pnand %p2649_p4, %p2821_p6 }
 0x304   : > { %p2647_p8 = pneg %p2646_p7 }
 0x306   : > { %2738 = dma.done.wait (%p2647_p8), %s2328_s5, 4096  }
 0x307   : > { %2740 = vsyncadd (%p2647_p8), %s2328_s5, 4294963200  ;;  %p13_p9 = scmp.ge.s32.totalorder %s2804_s18, 4   ;;  %s4129_s12 = smov %s2747_s13 }
 0x308   : > { %s4130_s13 = smov %s2751_s14  ;;  %s4131_s14 = smov %s2815_s21 }
 0x309   : > { %s4132_s15 = smov %s2804_s18  ;;  %15 = sbr.rel (!%p13_p9) target bundleno = 3 (0x3), region = 67 }
 0x30e   :  { %2334 = vsyncpa [#allocation3], 1 }
 0x30f   :  { %2336 = vsyncpa [#allocation3 + $0x1], 1 }

</bundles_post_ra>
